<compile_context>
chip_gen: v7x
topology: tpu7x:2x2x1
jax: 0.10.0
libtpu: 0.0.40
codegen_flags: <defaults>
</compile_context>

<pallas_src>
import functools

import jax
import jax.numpy as jnp
from jax import lax
from jax.experimental import pallas as pl
from jax.experimental.pallas import tpu as pltpu

KS = 7      # kernel_size
PAD = 3     # padding for kernel_size == 7


def _round_up(v, m):
    return -(-v // m) * m


def spatial_attention_kernel(wgt_ref, masks_ref, x_ref, o_ref,
                             sum_ref, max_ref, pad_a_ref, pad_m_ref,
                             *, c_total, h, w, rows_per_strip):
    # wgt_ref:   (2*KS*KS,) f32 SMEM     [0:49] avg-map taps, [49:98] max-map taps
    # masks_ref: (KS, H*W)  f32 VMEM     per-dx column-validity masks (0/1)
    # x_ref:     (1, c_blk, H*W) VMEM    lane-dense input channel block
    # o_ref:     (1, 1, H*W) f32 VMEM    lane-dense output block
    # sum_ref / max_ref:   (1, H*W) f32  aligned running channel sum / max
    # pad_a_ref / pad_m_ref: (1, H*W + 6*W + 6) f32  row+col padded conv buffers
    k = pl.program_id(1)
    k_last = pl.num_programs(1) - 1
    hw = h * w

    # ---- partial channel reduction over this (lane-dense) channel block ----
    xb = x_ref[0].astype(jnp.float32)                    # (c_blk, H*W)
    part_sum = jnp.sum(xb, axis=0, keepdims=True)        # (1, H*W)
    part_max = jnp.max(xb, axis=0, keepdims=True)        # (1, H*W)

    @pl.when(k == 0)
    def _init():
        sum_ref[...] = part_sum                          # single aligned store
        max_ref[...] = part_max

    @pl.when(k > 0)
    def _accumulate():
        sum_ref[...] = sum_ref[...] + part_sum           # aligned full-tile RMW
        max_ref[...] = jnp.maximum(max_ref[...], part_max)

    # ---- 7x7 conv over [avg, max] + sigmoid on the last channel step -------
    @pl.when(k == k_last)
    def _finalize():
        off0 = PAD * w + PAD                             # interior offset (3*W+3)
        inv_c = jnp.float32(1.0 / c_total)

        # Build the zero-bordered, row-padded flat maps (once per image).
        pad_a_ref[...] = jnp.zeros_like(pad_a_ref)
        pad_m_ref[...] = jnp.zeros_like(pad_m_ref)
        pad_a_ref[:, off0:off0 + hw] = sum_ref[...] * inv_c
        pad_m_ref[:, off0:off0 + hw] = max_ref[...]

        # Hoist all 98 scalar taps out of the strip loop (cheap SMEM reads).
        w_taps = [wgt_ref[t] for t in range(2 * KS * KS)]

        # Strip-mine over output rows so the working set stays in registers.
        n_strips = -(-h // rows_per_strip)
        for s in range(n_strips):
            r0 = s * rows_per_strip
            rows = min(rows_per_strip, h - r0)
            s0 = r0 * w
            slen = rows * w

            parts = []
            for dx in range(KS):
                p = None
                for dy in range(KS):
                    off = s0 + dy * w + dx               # constant flat shift
                    t = (w_taps[dy * KS + dx] * pad_a_ref[:, off:off + slen]
                         + w_taps[KS * KS + dy * KS + dx]
                         * pad_m_ref[:, off:off + slen])
                    p = t if p is None else p + t
                # Column-validity mask kills row-wrapped contributions.
                parts.append(masks_ref[dx:dx + 1, s0:s0 + slen] * p)

            # Pairwise tree-sum of the 7 per-dx partials.
            while len(parts) > 1:
                nxt = [parts[i] + parts[i + 1]
                       for i in range(0, len(parts) - 1, 2)]
                if len(parts) % 2:
                    nxt.append(parts[-1])
                parts = nxt

            o_ref[0, :, s0:s0 + slen] = jax.nn.sigmoid(parts[0])


def _pick_channel_block(c, hw, itemsize, budget_bytes):
    """Largest channel block (divisor of c, preferably a multiple of 8) whose
    double-buffered lane-dense input block fits the budget."""
    per_ch = 2 * _round_up(hw, 128) * itemsize           # double-buffered bytes/ch
    max_blk = max(1, int(budget_bytes // per_ch))
    if c <= max_blk:
        return c
    # Prefer multiples of 8 (full sublane use + always-legal BlockSpec).
    start = max_blk - (max_blk % 8)
    for b in range(start, 0, -8):
        if c % b == 0:
            return b
    # Fallback: largest divisor that fits (rare; e.g. prime C).
    for b in range(max_blk, 0, -1):
        if c % b == 0:
            return b
    return 1


def spatial_attention(x, weight):
    """x: (N, C, H, W); weight: (2, KS, KS) float32 -> (N, 1, H, W) float32."""
    n, c, h, w = x.shape
    hw = h * w
    itemsize = jnp.dtype(x.dtype).itemsize

    # Generation-aware VMEM budgets (v7x: 64 MiB/TC, v5e/v6e: 128 MiB).
    try:
        vmem_cap = int(pltpu.get_tpu_info().vmem_capacity_bytes)
    except Exception:
        vmem_cap = 64 << 20                              # conservative fallback
    x_budget = max(8 << 20, int(vmem_cap * 0.30))

    c_blk = _pick_channel_block(c, hw, itemsize, x_budget)
    nc = c // c_blk

    lane_hw = _round_up(hw, 128)
    lp = hw + 2 * (PAD * w + PAD)                        # padded flat map length
    x_block_bytes = _round_up(c_blk, 8) * lane_hw * itemsize

    # Extra input buffering only when there are many small channel steps.
    use_buffered3 = (nc >= 4) and (x_block_bytes < (2 << 20))
    n_x_bufs = 3 if use_buffered3 else 2

    need = (n_x_bufs * x_block_bytes                     # pipelined x blocks
            + 2 * 8 * lane_hw * 4                        # output block
            + 2 * 8 * lane_hw * 4                        # masks
            + 2 * 8 * lane_hw * 4                        # sum/max accumulators
            + 2 * 8 * _round_up(lp, 128) * 4)            # padded conv buffers
    vmem_limit = int(min(int(vmem_cap * 0.75),
                         max(need + (4 << 20), 16 << 20)))

    # Lane-dense views; these reshapes are free (contiguous, metadata only).
    x_flat = x.reshape(n, c, hw)
    wgt_flat = weight.astype(jnp.float32).reshape(-1)    # (98,) in SMEM

    # Per-dx column-validity masks: tap column x+dx-PAD must lie in [0, W).
    col = jnp.arange(hw, dtype=jnp.int32) % w
    dxs = jnp.arange(KS, dtype=jnp.int32)[:, None]
    masks = ((col[None, :] >= (PAD - dxs)) &
             (col[None, :] < (w + PAD - dxs))).astype(jnp.float32)   # (KS, H*W)

    # Strip size for the finalize: whole output rows, <= ~1024 lanes per strip.
    rows_per_strip = max(1, min(h, max(1, 1024 // max(w, 1))))

    x_spec_kwargs = {}
    if use_buffered3:
        x_spec_kwargs["pipeline_mode"] = pl.Buffered(3)
    x_spec = pl.BlockSpec((1, c_blk, hw), lambda i, k: (i, k, 0),
                          **x_spec_kwargs)

    kernel = functools.partial(spatial_attention_kernel,
                               c_total=c, h=h, w=w,
                               rows_per_strip=rows_per_strip)

    out_flat = pl.pallas_call(
        kernel,
        out_shape=jax.ShapeDtypeStruct((n, 1, hw), jnp.float32),
        grid=(n, nc),
        in_specs=[
            pl.BlockSpec(memory_space=pltpu.MemorySpace.SMEM),       # weights
            pl.BlockSpec((KS, hw), lambda i, k: (0, 0)),             # masks
            x_spec,                                                  # x block
        ],
        out_specs=pl.BlockSpec((1, 1, hw), lambda i, k: (i, 0, 0)),
        scratch_shapes=[
            pltpu.VMEM((1, hw), jnp.float32),   # running channel sum (aligned)
            pltpu.VMEM((1, hw), jnp.float32),   # running channel max (aligned)
            pltpu.VMEM((1, lp), jnp.float32),   # padded avg map (flat)
            pltpu.VMEM((1, lp), jnp.float32),   # padded max map (flat)
        ],
        compiler_params=pltpu.CompilerParams(
            dimension_semantics=("parallel", "arbitrary"),
            vmem_limit_bytes=vmem_limit),
    )(wgt_flat, masks, x_flat)

    return out_flat.reshape(n, 1, h, w)


def reference(x, weight):
    """Pure-JAX reference matching the PyTorch module."""
    avg = jnp.mean(x, axis=1, keepdims=True)
    mx = jnp.max(x, axis=1, keepdims=True)
    cat = jnp.concatenate([avg, mx], axis=1)                 # (N, 2, H, W)
    out = lax.conv_general_dilated(
        cat, weight.reshape(1, 2, KS, KS),
        window_strides=(1, 1),
        padding=((PAD, PAD), (PAD, PAD)),
        dimension_numbers=("NCHW", "OIHW", "NCHW"),
        precision=lax.Precision.HIGHEST)
    return jax.nn.sigmoid(out)


if __name__ == "__main__":
    key = jax.random.PRNGKey(0)
    kx, kw = jax.random.split(key)

    # Small shapes consistent with the module: batch=2, channels=4, spatial=16.
    x = jax.random.normal(kx, (2, 4, 16, 16), dtype=jnp.float32)

    # Deterministic synthetic conv weight, stored as (in=2, 7, 7) (out channel = 1).
    fan_in = 2 * KS * KS
    weight = jax.random.normal(kw, (2, KS, KS), dtype=jnp.float32) * (1.0 / fan_in) ** 0.5

    out = jax.block_until_ready(spatial_attention(x, weight))
    ref = reference(x, weight)

    assert out.shape == (2, 1, 16, 16), out.shape
    assert jnp.allclose(out, ref, atol=2e-5, rtol=1e-5), float(jnp.max(jnp.abs(out - ref)))
    print("KERNEL_OK")
</pallas_src>

<mosaic_0001>
module attributes {stable_mosaic.version = 11 : i64} {
  func.func @spatial_attention_kernel(%arg0: i32, %arg1: i32, %arg2: memref<98xf32, #tpu.memory_space<smem>>, %arg3: memref<7x256xf32, #tpu.memory_space<vmem>>, %arg4: memref<1x4x256xf32, #tpu.memory_space<vmem>>, %arg5: memref<1x1x256xf32, #tpu.memory_space<vmem>>, %arg6: memref<1x256xf32, #tpu.memory_space<vmem>>, %arg7: memref<1x256xf32, #tpu.memory_space<vmem>>, %arg8: memref<1x358xf32, #tpu.memory_space<vmem>>, %arg9: memref<1x358xf32, #tpu.memory_space<vmem>>) attributes {dimension_semantics = [#tpu.dimension_semantics<parallel>, #tpu.dimension_semantics<arbitrary>], iteration_bounds = array<i64: 2, 1>, scalar_prefetch = 0 : i64, scratch_operands = 4 : i64, tpu.core_type = #tpu.core_type<tc>, window_params = [{transform_indices = @transform_0, window_bounds = array<i64: 98>}, {pipeline_mode = #tpu.pipeline_mode<synchronous>, transform_indices = @transform_1, window_bounds = array<i64: 7, 256>}, {transform_indices = @transform_2, window_bounds = array<i64: 1, 4, 256>}, {transform_indices = @transform_3, window_bounds = array<i64: 1, 1, 256>}]} {
    %c0 = arith.constant 0 : index
    %c0_0 = arith.constant 0 : index
    %c0_1 = arith.constant 0 : index
    %0 = vector.load %arg4[%c0, %c0_0, %c0_1] : memref<1x4x256xf32, #tpu.memory_space<vmem>>, vector<1x4x256xf32>
    %1 = vector.shape_cast %0 : vector<1x4x256xf32> to vector<4x256xf32>
    %cst = arith.constant dense<0.000000e+00> : vector<256xf32>
    %2 = vector.multi_reduction <add>, %1, %cst [0] : vector<4x256xf32> to vector<256xf32>
    %3 = vector.shape_cast %2 : vector<256xf32> to vector<1x256xf32>
    %cst_2 = arith.constant dense<0xFF800000> : vector<256xf32>
    %4 = vector.multi_reduction <maximumf>, %1, %cst_2 [0] : vector<4x256xf32> to vector<256xf32>
    %5 = vector.shape_cast %4 : vector<256xf32> to vector<1x256xf32>
    %c0_i32 = arith.constant 0 : i32
    %6 = arith.cmpi eq, %arg1, %c0_i32 : i32
    %7 = arith.extui %6 : i1 to i32
    %c0_i32_3 = arith.constant 0 : i32
    %8 = arith.cmpi ne, %7, %c0_i32_3 : i32
    scf.if %8 {
      %c0_8 = arith.constant 0 : index
      %c0_9 = arith.constant 0 : index
      %15 = vector.load %arg6[%c0_8, %c0_9] : memref<1x256xf32, #tpu.memory_space<vmem>>, vector<1x256xf32>
      tpu.vector_store %arg6[%c0_8, %c0_9], %3 {strides = array<i32>} : memref<1x256xf32, #tpu.memory_space<vmem>>, vector<1x256xf32>,
      %c0_10 = arith.constant 0 : index
      %c0_11 = arith.constant 0 : index
      %16 = vector.load %arg7[%c0_10, %c0_11] : memref<1x256xf32, #tpu.memory_space<vmem>>, vector<1x256xf32>
      tpu.vector_store %arg7[%c0_10, %c0_11], %5 {strides = array<i32>} : memref<1x256xf32, #tpu.memory_space<vmem>>, vector<1x256xf32>,
    } else {
    }
    %c0_i32_4 = arith.constant 0 : i32
    %9 = arith.cmpi sgt, %arg1, %c0_i32_4 : i32
    %10 = arith.extui %9 : i1 to i32
    %c0_i32_5 = arith.constant 0 : i32
    %11 = arith.cmpi ne, %10, %c0_i32_5 : i32
    scf.if %11 {
      %c0_8 = arith.constant 0 : index
      %c0_9 = arith.constant 0 : index
      %15 = vector.load %arg6[%c0_8, %c0_9] : memref<1x256xf32, #tpu.memory_space<vmem>>, vector<1x256xf32>
      %16 = arith.addf %15, %3 : vector<1x256xf32>
      %c0_10 = arith.constant 0 : index
      %c0_11 = arith.constant 0 : index
      %17 = vector.load %arg6[%c0_10, %c0_11] : memref<1x256xf32, #tpu.memory_space<vmem>>, vector<1x256xf32>
      tpu.vector_store %arg6[%c0_10, %c0_11], %16 {strides = array<i32>} : memref<1x256xf32, #tpu.memory_space<vmem>>, vector<1x256xf32>,
      %c0_12 = arith.constant 0 : index
      %c0_13 = arith.constant 0 : index
      %18 = vector.load %arg7[%c0_12, %c0_13] : memref<1x256xf32, #tpu.memory_space<vmem>>, vector<1x256xf32>
      %19 = arith.maximumf %18, %5 : vector<1x256xf32>
      %c0_14 = arith.constant 0 : index
      %c0_15 = arith.constant 0 : index
      %20 = vector.load %arg7[%c0_14, %c0_15] : memref<1x256xf32, #tpu.memory_space<vmem>>, vector<1x256xf32>
      tpu.vector_store %arg7[%c0_14, %c0_15], %19 {strides = array<i32>} : memref<1x256xf32, #tpu.memory_space<vmem>>, vector<1x256xf32>,
    } else {
    }
    %c0_i32_6 = arith.constant 0 : i32
    %12 = arith.cmpi eq, %arg1, %c0_i32_6 : i32
    %13 = arith.extui %12 : i1 to i32
    %c0_i32_7 = arith.constant 0 : i32
    %14 = arith.cmpi ne, %13, %c0_i32_7 : i32
    scf.if %14 {
      %cst_8 = arith.constant 0.000000e+00 : f32
      %15 = vector.broadcast %cst_8 : f32 to vector<1x358xf32>
      %c0_9 = arith.constant 0 : index
      %c0_10 = arith.constant 0 : index
      %16 = vector.load %arg8[%c0_9, %c0_10] : memref<1x358xf32, #tpu.memory_space<vmem>>, vector<1x358xf32>
      tpu.vector_store %arg8[%c0_9, %c0_10], %15 {strides = array<i32>} : memref<1x358xf32, #tpu.memory_space<vmem>>, vector<1x358xf32>,
      %cst_11 = arith.constant 0.000000e+00 : f32
      %17 = vector.broadcast %cst_11 : f32 to vector<1x358xf32>
      %c0_12 = arith.constant 0 : index
      %c0_13 = arith.constant 0 : index
      %18 = vector.load %arg9[%c0_12, %c0_13] : memref<1x358xf32, #tpu.memory_space<vmem>>, vector<1x358xf32>
      tpu.vector_store %arg9[%c0_12, %c0_13], %17 {strides = array<i32>} : memref<1x358xf32, #tpu.memory_space<vmem>>, vector<1x358xf32>,
      %c0_14 = arith.constant 0 : index
      %c0_15 = arith.constant 0 : index
      %19 = vector.load %arg6[%c0_14, %c0_15] : memref<1x256xf32, #tpu.memory_space<vmem>>, vector<1x256xf32>
      %cst_16 = arith.constant 2.500000e-01 : f32
      %20 = vector.broadcast %cst_16 : f32 to vector<1x256xf32>
      %21 = arith.mulf %19, %20 : vector<1x256xf32>
      %c0_17 = arith.constant 0 : index
      %c51 = arith.constant 51 : index
      %22 = vector.load %arg8[%c0_17, %c51] : memref<1x358xf32, #tpu.memory_space<vmem>>, vector<1x256xf32>
      tpu.vector_store %arg8[%c0_17, %c51], %21 {strides = array<i32>} : memref<1x358xf32, #tpu.memory_space<vmem>>, vector<1x256xf32>,
      %c0_18 = arith.constant 0 : index
      %c0_19 = arith.constant 0 : index
      %23 = vector.load %arg7[%c0_18, %c0_19] : memref<1x256xf32, #tpu.memory_space<vmem>>, vector<1x256xf32>
      %c0_20 = arith.constant 0 : index
      %c51_21 = arith.constant 51 : index
      %24 = vector.load %arg9[%c0_20, %c51_21] : memref<1x358xf32, #tpu.memory_space<vmem>>, vector<1x256xf32>
      tpu.vector_store %arg9[%c0_20, %c51_21], %23 {strides = array<i32>} : memref<1x358xf32, #tpu.memory_space<vmem>>, vector<1x256xf32>,
      %c0_22 = arith.constant 0 : index
      %25 = memref.load %arg2[%c0_22] : memref<98xf32, #tpu.memory_space<smem>>
      %c1 = arith.constant 1 : index
      %26 = memref.load %arg2[%c1] : memref<98xf32, #tpu.memory_space<smem>>
      %c2 = arith.constant 2 : index
      %27 = memref.load %arg2[%c2] : memref<98xf32, #tpu.memory_space<smem>>
      %c3 = arith.constant 3 : index
      %28 = memref.load %arg2[%c3] : memref<98xf32, #tpu.memory_space<smem>>
      %c4 = arith.constant 4 : index
      %29 = memref.load %arg2[%c4] : memref<98xf32, #tpu.memory_space<smem>>
      %c5 = arith.constant 5 : index
      %30 = memref.load %arg2[%c5] : memref<98xf32, #tpu.memory_space<smem>>
      %c6 = arith.constant 6 : index
      %31 = memref.load %arg2[%c6] : memref<98xf32, #tpu.memory_space<smem>>
      %c7 = arith.constant 7 : index
      %32 = memref.load %arg2[%c7] : memref<98xf32, #tpu.memory_space<smem>>
      %c8 = arith.constant 8 : index
      %33 = memref.load %arg2[%c8] : memref<98xf32, #tpu.memory_space<smem>>
      %c9 = arith.constant 9 : index
      %34 = memref.load %arg2[%c9] : memref<98xf32, #tpu.memory_space<smem>>
      %c10 = arith.constant 10 : index
      %35 = memref.load %arg2[%c10] : memref<98xf32, #tpu.memory_space<smem>>
      %c11 = arith.constant 11 : index
      %36 = memref.load %arg2[%c11] : memref<98xf32, #tpu.memory_space<smem>>
      %c12 = arith.constant 12 : index
      %37 = memref.load %arg2[%c12] : memref<98xf32, #tpu.memory_space<smem>>
      %c13 = arith.constant 13 : index
      %38 = memref.load %arg2[%c13] : memref<98xf32, #tpu.memory_space<smem>>
      %c14 = arith.constant 14 : index
      %39 = memref.load %arg2[%c14] : memref<98xf32, #tpu.memory_space<smem>>
      %c15 = arith.constant 15 : index
      %40 = memref.load %arg2[%c15] : memref<98xf32, #tpu.memory_space<smem>>
      %c16 = arith.constant 16 : index
      %41 = memref.load %arg2[%c16] : memref<98xf32, #tpu.memory_space<smem>>
      %c17 = arith.constant 17 : index
      %42 = memref.load %arg2[%c17] : memref<98xf32, #tpu.memory_space<smem>>
      %c18 = arith.constant 18 : index
      %43 = memref.load %arg2[%c18] : memref<98xf32, #tpu.memory_space<smem>>
      %c19 = arith.constant 19 : index
      %44 = memref.load %arg2[%c19] : memref<98xf32, #tpu.memory_space<smem>>
      %c20 = arith.constant 20 : index
      %45 = memref.load %arg2[%c20] : memref<98xf32, #tpu.memory_space<smem>>
      %c21 = arith.constant 21 : index
      %46 = memref.load %arg2[%c21] : memref<98xf32, #tpu.memory_space<smem>>
      %c22 = arith.constant 22 : index
      %47 = memref.load %arg2[%c22] : memref<98xf32, #tpu.memory_space<smem>>
      %c23 = arith.constant 23 : index
      %48 = memref.load %arg2[%c23] : memref<98xf32, #tpu.memory_space<smem>>
      %c24 = arith.constant 24 : index
      %49 = memref.load %arg2[%c24] : memref<98xf32, #tpu.memory_space<smem>>
      %c25 = arith.constant 25 : index
      %50 = memref.load %arg2[%c25] : memref<98xf32, #tpu.memory_space<smem>>
      %c26 = arith.constant 26 : index
      %51 = memref.load %arg2[%c26] : memref<98xf32, #tpu.memory_space<smem>>
      %c27 = arith.constant 27 : index
      %52 = memref.load %arg2[%c27] : memref<98xf32, #tpu.memory_space<smem>>
      %c28 = arith.constant 28 : index
      %53 = memref.load %arg2[%c28] : memref<98xf32, #tpu.memory_space<smem>>
      %c29 = arith.constant 29 : index
      %54 = memref.load %arg2[%c29] : memref<98xf32, #tpu.memory_space<smem>>
      %c30 = arith.constant 30 : index
      %55 = memref.load %arg2[%c30] : memref<98xf32, #tpu.memory_space<smem>>
      %c31 = arith.constant 31 : index
      %56 = memref.load %arg2[%c31] : memref<98xf32, #tpu.memory_space<smem>>
      %c32 = arith.constant 32 : index
      %57 = memref.load %arg2[%c32] : memref<98xf32, #tpu.memory_space<smem>>
      %c33 = arith.constant 33 : index
      %58 = memref.load %arg2[%c33] : memref<98xf32, #tpu.memory_space<smem>>
      %c34 = arith.constant 34 : index
      %59 = memref.load %arg2[%c34] : memref<98xf32, #tpu.memory_space<smem>>
      %c35 = arith.constant 35 : index
      %60 = memref.load %arg2[%c35] : memref<98xf32, #tpu.memory_space<smem>>
      %c36 = arith.constant 36 : index
      %61 = memref.load %arg2[%c36] : memref<98xf32, #tpu.memory_space<smem>>
      %c37 = arith.constant 37 : index
      %62 = memref.load %arg2[%c37] : memref<98xf32, #tpu.memory_space<smem>>
      %c38 = arith.constant 38 : index
      %63 = memref.load %arg2[%c38] : memref<98xf32, #tpu.memory_space<smem>>
      %c39 = arith.constant 39 : index
      %64 = memref.load %arg2[%c39] : memref<98xf32, #tpu.memory_space<smem>>
      %c40 = arith.constant 40 : index
      %65 = memref.load %arg2[%c40] : memref<98xf32, #tpu.memory_space<smem>>
      %c41 = arith.constant 41 : index
      %66 = memref.load %arg2[%c41] : memref<98xf32, #tpu.memory_space<smem>>
      %c42 = arith.constant 42 : index
      %67 = memref.load %arg2[%c42] : memref<98xf32, #tpu.memory_space<smem>>
      %c43 = arith.constant 43 : index
      %68 = memref.load %arg2[%c43] : memref<98xf32, #tpu.memory_space<smem>>
      %c44 = arith.constant 44 : index
      %69 = memref.load %arg2[%c44] : memref<98xf32, #tpu.memory_space<smem>>
      %c45 = arith.constant 45 : index
      %70 = memref.load %arg2[%c45] : memref<98xf32, #tpu.memory_space<smem>>
      %c46 = arith.constant 46 : index
      %71 = memref.load %arg2[%c46] : memref<98xf32, #tpu.memory_space<smem>>
      %c47 = arith.constant 47 : index
      %72 = memref.load %arg2[%c47] : memref<98xf32, #tpu.memory_space<smem>>
      %c48 = arith.constant 48 : index
      %73 = memref.load %arg2[%c48] : memref<98xf32, #tpu.memory_space<smem>>
      %c49 = arith.constant 49 : index
      %74 = memref.load %arg2[%c49] : memref<98xf32, #tpu.memory_space<smem>>
      %c50 = arith.constant 50 : index
      %75 = memref.load %arg2[%c50] : memref<98xf32, #tpu.memory_space<smem>>
      %c51_23 = arith.constant 51 : index
      %76 = memref.load %arg2[%c51_23] : memref<98xf32, #tpu.memory_space<smem>>
      %c52 = arith.constant 52 : index
      %77 = memref.load %arg2[%c52] : memref<98xf32, #tpu.memory_space<smem>>
      %c53 = arith.constant 53 : index
      %78 = memref.load %arg2[%c53] : memref<98xf32, #tpu.memory_space<smem>>
      %c54 = arith.constant 54 : index
      %79 = memref.load %arg2[%c54] : memref<98xf32, #tpu.memory_space<smem>>
      %c55 = arith.constant 55 : index
      %80 = memref.load %arg2[%c55] : memref<98xf32, #tpu.memory_space<smem>>
      %c56 = arith.constant 56 : index
      %81 = memref.load %arg2[%c56] : memref<98xf32, #tpu.memory_space<smem>>
      %c57 = arith.constant 57 : index
      %82 = memref.load %arg2[%c57] : memref<98xf32, #tpu.memory_space<smem>>
      %c58 = arith.constant 58 : index
      %83 = memref.load %arg2[%c58] : memref<98xf32, #tpu.memory_space<smem>>
      %c59 = arith.constant 59 : index
      %84 = memref.load %arg2[%c59] : memref<98xf32, #tpu.memory_space<smem>>
      %c60 = arith.constant 60 : index
      %85 = memref.load %arg2[%c60] : memref<98xf32, #tpu.memory_space<smem>>
      %c61 = arith.constant 61 : index
      %86 = memref.load %arg2[%c61] : memref<98xf32, #tpu.memory_space<smem>>
      %c62 = arith.constant 62 : index
      %87 = memref.load %arg2[%c62] : memref<98xf32, #tpu.memory_space<smem>>
      %c63 = arith.constant 63 : index
      %88 = memref.load %arg2[%c63] : memref<98xf32, #tpu.memory_space<smem>>
      %c64 = arith.constant 64 : index
      %89 = memref.load %arg2[%c64] : memref<98xf32, #tpu.memory_space<smem>>
      %c65 = arith.constant 65 : index
      %90 = memref.load %arg2[%c65] : memref<98xf32, #tpu.memory_space<smem>>
      %c66 = arith.constant 66 : index
      %91 = memref.load %arg2[%c66] : memref<98xf32, #tpu.memory_space<smem>>
      %c67 = arith.constant 67 : index
      %92 = memref.load %arg2[%c67] : memref<98xf32, #tpu.memory_space<smem>>
      %c68 = arith.constant 68 : index
      %93 = memref.load %arg2[%c68] : memref<98xf32, #tpu.memory_space<smem>>
      %c69 = arith.constant 69 : index
      %94 = memref.load %arg2[%c69] : memref<98xf32, #tpu.memory_space<smem>>
      %c70 = arith.constant 70 : index
      %95 = memref.load %arg2[%c70] : memref<98xf32, #tpu.memory_space<smem>>
      %c71 = arith.constant 71 : index
      %96 = memref.load %arg2[%c71] : memref<98xf32, #tpu.memory_space<smem>>
      %c72 = arith.constant 72 : index
      %97 = memref.load %arg2[%c72] : memref<98xf32, #tpu.memory_space<smem>>
      %c73 = arith.constant 73 : index
      %98 = memref.load %arg2[%c73] : memref<98xf32, #tpu.memory_space<smem>>
      %c74 = arith.constant 74 : index
      %99 = memref.load %arg2[%c74] : memref<98xf32, #tpu.memory_space<smem>>
      %c75 = arith.constant 75 : index
      %100 = memref.load %arg2[%c75] : memref<98xf32, #tpu.memory_space<smem>>
      %c76 = arith.constant 76 : index
      %101 = memref.load %arg2[%c76] : memref<98xf32, #tpu.memory_space<smem>>
      %c77 = arith.constant 77 : index
      %102 = memref.load %arg2[%c77] : memref<98xf32, #tpu.memory_space<smem>>
      %c78 = arith.constant 78 : index
      %103 = memref.load %arg2[%c78] : memref<98xf32, #tpu.memory_space<smem>>
      %c79 = arith.constant 79 : index
      %104 = memref.load %arg2[%c79] : memref<98xf32, #tpu.memory_space<smem>>
      %c80 = arith.constant 80 : index
      %105 = memref.load %arg2[%c80] : memref<98xf32, #tpu.memory_space<smem>>
      %c81 = arith.constant 81 : index
      %106 = memref.load %arg2[%c81] : memref<98xf32, #tpu.memory_space<smem>>
      %c82 = arith.constant 82 : index
      %107 = memref.load %arg2[%c82] : memref<98xf32, #tpu.memory_space<smem>>
      %c83 = arith.constant 83 : index
      %108 = memref.load %arg2[%c83] : memref<98xf32, #tpu.memory_space<smem>>
      %c84 = arith.constant 84 : index
      %109 = memref.load %arg2[%c84] : memref<98xf32, #tpu.memory_space<smem>>
      %c85 = arith.constant 85 : index
      %110 = memref.load %arg2[%c85] : memref<98xf32, #tpu.memory_space<smem>>
      %c86 = arith.constant 86 : index
      %111 = memref.load %arg2[%c86] : memref<98xf32, #tpu.memory_space<smem>>
      %c87 = arith.constant 87 : index
      %112 = memref.load %arg2[%c87] : memref<98xf32, #tpu.memory_space<smem>>
      %c88 = arith.constant 88 : index
      %113 = memref.load %arg2[%c88] : memref<98xf32, #tpu.memory_space<smem>>
      %c89 = arith.constant 89 : index
      %114 = memref.load %arg2[%c89] : memref<98xf32, #tpu.memory_space<smem>>
      %c90 = arith.constant 90 : index
      %115 = memref.load %arg2[%c90] : memref<98xf32, #tpu.memory_space<smem>>
      %c91 = arith.constant 91 : index
      %116 = memref.load %arg2[%c91] : memref<98xf32, #tpu.memory_space<smem>>
      %c92 = arith.constant 92 : index
      %117 = memref.load %arg2[%c92] : memref<98xf32, #tpu.memory_space<smem>>
      %c93 = arith.constant 93 : index
      %118 = memref.load %arg2[%c93] : memref<98xf32, #tpu.memory_space<smem>>
      %c94 = arith.constant 94 : index
      %119 = memref.load %arg2[%c94] : memref<98xf32, #tpu.memory_space<smem>>
      %c95 = arith.constant 95 : index
      %120 = memref.load %arg2[%c95] : memref<98xf32, #tpu.memory_space<smem>>
      %c96 = arith.constant 96 : index
      %121 = memref.load %arg2[%c96] : memref<98xf32, #tpu.memory_space<smem>>
      %c97 = arith.constant 97 : index
      %122 = memref.load %arg2[%c97] : memref<98xf32, #tpu.memory_space<smem>>
      %c0_24 = arith.constant 0 : index
      %c0_25 = arith.constant 0 : index
      %123 = vector.load %arg8[%c0_24, %c0_25] : memref<1x358xf32, #tpu.memory_space<vmem>>, vector<1x256xf32>
      %124 = vector.broadcast %25 : f32 to vector<1x256xf32>
      %125 = arith.mulf %124, %123 : vector<1x256xf32>
      %c0_26 = arith.constant 0 : index
      %c0_27 = arith.constant 0 : index
      %126 = vector.load %arg9[%c0_26, %c0_27] : memref<1x358xf32, #tpu.memory_space<vmem>>, vector<1x256xf32>
      %127 = vector.broadcast %74 : f32 to vector<1x256xf32>
      %128 = arith.mulf %127, %126 : vector<1x256xf32>
      %129 = arith.addf %125, %128 : vector<1x256xf32>
      %c0_28 = arith.constant 0 : index
      %c16_29 = arith.constant 16 : index
      %130 = vector.load %arg8[%c0_28, %c16_29] : memref<1x358xf32, #tpu.memory_space<vmem>>, vector<1x256xf32>
      %131 = vector.broadcast %32 : f32 to vector<1x256xf32>
      %132 = arith.mulf %131, %130 : vector<1x256xf32>
      %c0_30 = arith.constant 0 : index
      %c16_31 = arith.constant 16 : index
      %133 = vector.load %arg9[%c0_30, %c16_31] : memref<1x358xf32, #tpu.memory_space<vmem>>, vector<1x256xf32>
      %134 = vector.broadcast %81 : f32 to vector<1x256xf32>
      %135 = arith.mulf %134, %133 : vector<1x256xf32>
      %136 = arith.addf %132, %135 : vector<1x256xf32>
      %137 = arith.addf %129, %136 : vector<1x256xf32>
      %c0_32 = arith.constant 0 : index
      %c32_33 = arith.constant 32 : index
      %138 = vector.load %arg8[%c0_32, %c32_33] : memref<1x358xf32, #tpu.memory_space<vmem>>, vector<1x256xf32>
      %139 = vector.broadcast %39 : f32 to vector<1x256xf32>
      %140 = arith.mulf %139, %138 : vector<1x256xf32>
      %c0_34 = arith.constant 0 : index
      %c32_35 = arith.constant 32 : index
      %141 = vector.load %arg9[%c0_34, %c32_35] : memref<1x358xf32, #tpu.memory_space<vmem>>, vector<1x256xf32>
      %142 = vector.broadcast %88 : f32 to vector<1x256xf32>
      %143 = arith.mulf %142, %141 : vector<1x256xf32>
      %144 = arith.addf %140, %143 : vector<1x256xf32>
      %145 = arith.addf %137, %144 : vector<1x256xf32>
      %c0_36 = arith.constant 0 : index
      %c48_37 = arith.constant 48 : index
      %146 = vector.load %arg8[%c0_36, %c48_37] : memref<1x358xf32, #tpu.memory_space<vmem>>, vector<1x256xf32>
      %147 = vector.broadcast %46 : f32 to vector<1x256xf32>
      %148 = arith.mulf %147, %146 : vector<1x256xf32>
      %c0_38 = arith.constant 0 : index
      %c48_39 = arith.constant 48 : index
      %149 = vector.load %arg9[%c0_38, %c48_39] : memref<1x358xf32, #tpu.memory_space<vmem>>, vector<1x256xf32>
      %150 = vector.broadcast %95 : f32 to vector<1x256xf32>
      %151 = arith.mulf %150, %149 : vector<1x256xf32>
      %152 = arith.addf %148, %151 : vector<1x256xf32>
      %153 = arith.addf %145, %152 : vector<1x256xf32>
      %c0_40 = arith.constant 0 : index
      %c64_41 = arith.constant 64 : index
      %154 = vector.load %arg8[%c0_40, %c64_41] : memref<1x358xf32, #tpu.memory_space<vmem>>, vector<1x256xf32>
      %155 = vector.broadcast %53 : f32 to vector<1x256xf32>
      %156 = arith.mulf %155, %154 : vector<1x256xf32>
      %c0_42 = arith.constant 0 : index
      %c64_43 = arith.constant 64 : index
      %157 = vector.load %arg9[%c0_42, %c64_43] : memref<1x358xf32, #tpu.memory_space<vmem>>, vector<1x256xf32>
      %158 = vector.broadcast %102 : f32 to vector<1x256xf32>
      %159 = arith.mulf %158, %157 : vector<1x256xf32>
      %160 = arith.addf %156, %159 : vector<1x256xf32>
      %161 = arith.addf %153, %160 : vector<1x256xf32>
      %c0_44 = arith.constant 0 : index
      %c80_45 = arith.constant 80 : index
      %162 = vector.load %arg8[%c0_44, %c80_45] : memref<1x358xf32, #tpu.memory_space<vmem>>, vector<1x256xf32>
      %163 = vector.broadcast %60 : f32 to vector<1x256xf32>
      %164 = arith.mulf %163, %162 : vector<1x256xf32>
      %c0_46 = arith.constant 0 : index
      %c80_47 = arith.constant 80 : index
      %165 = vector.load %arg9[%c0_46, %c80_47] : memref<1x358xf32, #tpu.memory_space<vmem>>, vector<1x256xf32>
      %166 = vector.broadcast %109 : f32 to vector<1x256xf32>
      %167 = arith.mulf %166, %165 : vector<1x256xf32>
      %168 = arith.addf %164, %167 : vector<1x256xf32>
      %169 = arith.addf %161, %168 : vector<1x256xf32>
      %c0_48 = arith.constant 0 : index
      %c96_49 = arith.constant 96 : index
      %170 = vector.load %arg8[%c0_48, %c96_49] : memref<1x358xf32, #tpu.memory_space<vmem>>, vector<1x256xf32>
      %171 = vector.broadcast %67 : f32 to vector<1x256xf32>
      %172 = arith.mulf %171, %170 : vector<1x256xf32>
      %c0_50 = arith.constant 0 : index
      %c96_51 = arith.constant 96 : index
      %173 = vector.load %arg9[%c0_50, %c96_51] : memref<1x358xf32, #tpu.memory_space<vmem>>, vector<1x256xf32>
      %174 = vector.broadcast %116 : f32 to vector<1x256xf32>
      %175 = arith.mulf %174, %173 : vector<1x256xf32>
      %176 = arith.addf %172, %175 : vector<1x256xf32>
      %177 = arith.addf %169, %176 : vector<1x256xf32>
      %c0_52 = arith.constant 0 : index
      %c0_53 = arith.constant 0 : index
      %178 = vector.load %arg3[%c0_52, %c0_53] : memref<7x256xf32, #tpu.memory_space<vmem>>, vector<1x256xf32>
      %179 = arith.mulf %178, %177 : vector<1x256xf32>
      %c0_54 = arith.constant 0 : index
      %c1_55 = arith.constant 1 : index
      %180 = vector.load %arg8[%c0_54, %c1_55] : memref<1x358xf32, #tpu.memory_space<vmem>>, vector<1x256xf32>
      %181 = vector.broadcast %26 : f32 to vector<1x256xf32>
      %182 = arith.mulf %181, %180 : vector<1x256xf32>
      %c0_56 = arith.constant 0 : index
      %c1_57 = arith.constant 1 : index
      %183 = vector.load %arg9[%c0_56, %c1_57] : memref<1x358xf32, #tpu.memory_space<vmem>>, vector<1x256xf32>
      %184 = vector.broadcast %75 : f32 to vector<1x256xf32>
      %185 = arith.mulf %184, %183 : vector<1x256xf32>
      %186 = arith.addf %182, %185 : vector<1x256xf32>
      %c0_58 = arith.constant 0 : index
      %c17_59 = arith.constant 17 : index
      %187 = vector.load %arg8[%c0_58, %c17_59] : memref<1x358xf32, #tpu.memory_space<vmem>>, vector<1x256xf32>
      %188 = vector.broadcast %33 : f32 to vector<1x256xf32>
      %189 = arith.mulf %188, %187 : vector<1x256xf32>
      %c0_60 = arith.constant 0 : index
      %c17_61 = arith.constant 17 : index
      %190 = vector.load %arg9[%c0_60, %c17_61] : memref<1x358xf32, #tpu.memory_space<vmem>>, vector<1x256xf32>
      %191 = vector.broadcast %82 : f32 to vector<1x256xf32>
      %192 = arith.mulf %191, %190 : vector<1x256xf32>
      %193 = arith.addf %189, %192 : vector<1x256xf32>
      %194 = arith.addf %186, %193 : vector<1x256xf32>
      %c0_62 = arith.constant 0 : index
      %c33_63 = arith.constant 33 : index
      %195 = vector.load %arg8[%c0_62, %c33_63] : memref<1x358xf32, #tpu.memory_space<vmem>>, vector<1x256xf32>
      %196 = vector.broadcast %40 : f32 to vector<1x256xf32>
      %197 = arith.mulf %196, %195 : vector<1x256xf32>
      %c0_64 = arith.constant 0 : index
      %c33_65 = arith.constant 33 : index
      %198 = vector.load %arg9[%c0_64, %c33_65] : memref<1x358xf32, #tpu.memory_space<vmem>>, vector<1x256xf32>
      %199 = vector.broadcast %89 : f32 to vector<1x256xf32>
      %200 = arith.mulf %199, %198 : vector<1x256xf32>
      %201 = arith.addf %197, %200 : vector<1x256xf32>
      %202 = arith.addf %194, %201 : vector<1x256xf32>
      %c0_66 = arith.constant 0 : index
      %c49_67 = arith.constant 49 : index
      %203 = vector.load %arg8[%c0_66, %c49_67] : memref<1x358xf32, #tpu.memory_space<vmem>>, vector<1x256xf32>
      %204 = vector.broadcast %47 : f32 to vector<1x256xf32>
      %205 = arith.mulf %204, %203 : vector<1x256xf32>
      %c0_68 = arith.constant 0 : index
      %c49_69 = arith.constant 49 : index
      %206 = vector.load %arg9[%c0_68, %c49_69] : memref<1x358xf32, #tpu.memory_space<vmem>>, vector<1x256xf32>
      %207 = vector.broadcast %96 : f32 to vector<1x256xf32>
      %208 = arith.mulf %207, %206 : vector<1x256xf32>
      %209 = arith.addf %205, %208 : vector<1x256xf32>
      %210 = arith.addf %202, %209 : vector<1x256xf32>
      %c0_70 = arith.constant 0 : index
      %c65_71 = arith.constant 65 : index
      %211 = vector.load %arg8[%c0_70, %c65_71] : memref<1x358xf32, #tpu.memory_space<vmem>>, vector<1x256xf32>
      %212 = vector.broadcast %54 : f32 to vector<1x256xf32>
      %213 = arith.mulf %212, %211 : vector<1x256xf32>
      %c0_72 = arith.constant 0 : index
      %c65_73 = arith.constant 65 : index
      %214 = vector.load %arg9[%c0_72, %c65_73] : memref<1x358xf32, #tpu.memory_space<vmem>>, vector<1x256xf32>
      %215 = vector.broadcast %103 : f32 to vector<1x256xf32>
      %216 = arith.mulf %215, %214 : vector<1x256xf32>
      %217 = arith.addf %213, %216 : vector<1x256xf32>
      %218 = arith.addf %210, %217 : vector<1x256xf32>
      %c0_74 = arith.constant 0 : index
      %c81_75 = arith.constant 81 : index
      %219 = vector.load %arg8[%c0_74, %c81_75] : memref<1x358xf32, #tpu.memory_space<vmem>>, vector<1x256xf32>
      %220 = vector.broadcast %61 : f32 to vector<1x256xf32>
      %221 = arith.mulf %220, %219 : vector<1x256xf32>
      %c0_76 = arith.constant 0 : index
      %c81_77 = arith.constant 81 : index
      %222 = vector.load %arg9[%c0_76, %c81_77] : memref<1x358xf32, #tpu.memory_space<vmem>>, vector<1x256xf32>
      %223 = vector.broadcast %110 : f32 to vector<1x256xf32>
      %224 = arith.mulf %223, %222 : vector<1x256xf32>
      %225 = arith.addf %221, %224 : vector<1x256xf32>
      %226 = arith.addf %218, %225 : vector<1x256xf32>
      %c0_78 = arith.constant 0 : index
      %c97_79 = arith.constant 97 : index
      %227 = vector.load %arg8[%c0_78, %c97_79] : memref<1x358xf32, #tpu.memory_space<vmem>>, vector<1x256xf32>
      %228 = vector.broadcast %68 : f32 to vector<1x256xf32>
      %229 = arith.mulf %228, %227 : vector<1x256xf32>
      %c0_80 = arith.constant 0 : index
      %c97_81 = arith.constant 97 : index
      %230 = vector.load %arg9[%c0_80, %c97_81] : memref<1x358xf32, #tpu.memory_space<vmem>>, vector<1x256xf32>
      %231 = vector.broadcast %117 : f32 to vector<1x256xf32>
      %232 = arith.mulf %231, %230 : vector<1x256xf32>
      %233 = arith.addf %229, %232 : vector<1x256xf32>
      %234 = arith.addf %226, %233 : vector<1x256xf32>
      %c1_82 = arith.constant 1 : index
      %c0_83 = arith.constant 0 : index
      %235 = vector.load %arg3[%c1_82, %c0_83] : memref<7x256xf32, #tpu.memory_space<vmem>>, vector<1x256xf32>
      %236 = arith.mulf %235, %234 : vector<1x256xf32>
      %c0_84 = arith.constant 0 : index
      %c2_85 = arith.constant 2 : index
      %237 = vector.load %arg8[%c0_84, %c2_85] : memref<1x358xf32, #tpu.memory_space<vmem>>, vector<1x256xf32>
      %238 = vector.broadcast %27 : f32 to vector<1x256xf32>
      %239 = arith.mulf %238, %237 : vector<1x256xf32>
      %c0_86 = arith.constant 0 : index
      %c2_87 = arith.constant 2 : index
      %240 = vector.load %arg9[%c0_86, %c2_87] : memref<1x358xf32, #tpu.memory_space<vmem>>, vector<1x256xf32>
      %241 = vector.broadcast %76 : f32 to vector<1x256xf32>
      %242 = arith.mulf %241, %240 : vector<1x256xf32>
      %243 = arith.addf %239, %242 : vector<1x256xf32>
      %c0_88 = arith.constant 0 : index
      %c18_89 = arith.constant 18 : index
      %244 = vector.load %arg8[%c0_88, %c18_89] : memref<1x358xf32, #tpu.memory_space<vmem>>, vector<1x256xf32>
      %245 = vector.broadcast %34 : f32 to vector<1x256xf32>
      %246 = arith.mulf %245, %244 : vector<1x256xf32>
      %c0_90 = arith.constant 0 : index
      %c18_91 = arith.constant 18 : index
      %247 = vector.load %arg9[%c0_90, %c18_91] : memref<1x358xf32, #tpu.memory_space<vmem>>, vector<1x256xf32>
      %248 = vector.broadcast %83 : f32 to vector<1x256xf32>
      %249 = arith.mulf %248, %247 : vector<1x256xf32>
      %250 = arith.addf %246, %249 : vector<1x256xf32>
      %251 = arith.addf %243, %250 : vector<1x256xf32>
      %c0_92 = arith.constant 0 : index
      %c34_93 = arith.constant 34 : index
      %252 = vector.load %arg8[%c0_92, %c34_93] : memref<1x358xf32, #tpu.memory_space<vmem>>, vector<1x256xf32>
      %253 = vector.broadcast %41 : f32 to vector<1x256xf32>
      %254 = arith.mulf %253, %252 : vector<1x256xf32>
      %c0_94 = arith.constant 0 : index
      %c34_95 = arith.constant 34 : index
      %255 = vector.load %arg9[%c0_94, %c34_95] : memref<1x358xf32, #tpu.memory_space<vmem>>, vector<1x256xf32>
      %256 = vector.broadcast %90 : f32 to vector<1x256xf32>
      %257 = arith.mulf %256, %255 : vector<1x256xf32>
      %258 = arith.addf %254, %257 : vector<1x256xf32>
      %259 = arith.addf %251, %258 : vector<1x256xf32>
      %c0_96 = arith.constant 0 : index
      %c50_97 = arith.constant 50 : index
      %260 = vector.load %arg8[%c0_96, %c50_97] : memref<1x358xf32, #tpu.memory_space<vmem>>, vector<1x256xf32>
      %261 = vector.broadcast %48 : f32 to vector<1x256xf32>
      %262 = arith.mulf %261, %260 : vector<1x256xf32>
      %c0_98 = arith.constant 0 : index
      %c50_99 = arith.constant 50 : index
      %263 = vector.load %arg9[%c0_98, %c50_99] : memref<1x358xf32, #tpu.memory_space<vmem>>, vector<1x256xf32>
      %264 = vector.broadcast %97 : f32 to vector<1x256xf32>
      %265 = arith.mulf %264, %263 : vector<1x256xf32>
      %266 = arith.addf %262, %265 : vector<1x256xf32>
      %267 = arith.addf %259, %266 : vector<1x256xf32>
      %c0_100 = arith.constant 0 : index
      %c66_101 = arith.constant 66 : index
      %268 = vector.load %arg8[%c0_100, %c66_101] : memref<1x358xf32, #tpu.memory_space<vmem>>, vector<1x256xf32>
      %269 = vector.broadcast %55 : f32 to vector<1x256xf32>
      %270 = arith.mulf %269, %268 : vector<1x256xf32>
      %c0_102 = arith.constant 0 : index
      %c66_103 = arith.constant 66 : index
      %271 = vector.load %arg9[%c0_102, %c66_103] : memref<1x358xf32, #tpu.memory_space<vmem>>, vector<1x256xf32>
      %272 = vector.broadcast %104 : f32 to vector<1x256xf32>
      %273 = arith.mulf %272, %271 : vector<1x256xf32>
      %274 = arith.addf %270, %273 : vector<1x256xf32>
      %275 = arith.addf %267, %274 : vector<1x256xf32>
      %c0_104 = arith.constant 0 : index
      %c82_105 = arith.constant 82 : index
      %276 = vector.load %arg8[%c0_104, %c82_105] : memref<1x358xf32, #tpu.memory_space<vmem>>, vector<1x256xf32>
      %277 = vector.broadcast %62 : f32 to vector<1x256xf32>
      %278 = arith.mulf %277, %276 : vector<1x256xf32>
      %c0_106 = arith.constant 0 : index
      %c82_107 = arith.constant 82 : index
      %279 = vector.load %arg9[%c0_106, %c82_107] : memref<1x358xf32, #tpu.memory_space<vmem>>, vector<1x256xf32>
      %280 = vector.broadcast %111 : f32 to vector<1x256xf32>
      %281 = arith.mulf %280, %279 : vector<1x256xf32>
      %282 = arith.addf %278, %281 : vector<1x256xf32>
      %283 = arith.addf %275, %282 : vector<1x256xf32>
      %c0_108 = arith.constant 0 : index
      %c98 = arith.constant 98 : index
      %284 = vector.load %arg8[%c0_108, %c98] : memref<1x358xf32, #tpu.memory_space<vmem>>, vector<1x256xf32>
      %285 = vector.broadcast %69 : f32 to vector<1x256xf32>
      %286 = arith.mulf %285, %284 : vector<1x256xf32>
      %c0_109 = arith.constant 0 : index
      %c98_110 = arith.constant 98 : index
      %287 = vector.load %arg9[%c0_109, %c98_110] : memref<1x358xf32, #tpu.memory_space<vmem>>, vector<1x256xf32>
      %288 = vector.broadcast %118 : f32 to vector<1x256xf32>
      %289 = arith.mulf %288, %287 : vector<1x256xf32>
      %290 = arith.addf %286, %289 : vector<1x256xf32>
      %291 = arith.addf %283, %290 : vector<1x256xf32>
      %c2_111 = arith.constant 2 : index
      %c0_112 = arith.constant 0 : index
      %292 = vector.load %arg3[%c2_111, %c0_112] : memref<7x256xf32, #tpu.memory_space<vmem>>, vector<1x256xf32>
      %293 = arith.mulf %292, %291 : vector<1x256xf32>
      %c0_113 = arith.constant 0 : index
      %c3_114 = arith.constant 3 : index
      %294 = vector.load %arg8[%c0_113, %c3_114] : memref<1x358xf32, #tpu.memory_space<vmem>>, vector<1x256xf32>
      %295 = vector.broadcast %28 : f32 to vector<1x256xf32>
      %296 = arith.mulf %295, %294 : vector<1x256xf32>
      %c0_115 = arith.constant 0 : index
      %c3_116 = arith.constant 3 : index
      %297 = vector.load %arg9[%c0_115, %c3_116] : memref<1x358xf32, #tpu.memory_space<vmem>>, vector<1x256xf32>
      %298 = vector.broadcast %77 : f32 to vector<1x256xf32>
      %299 = arith.mulf %298, %297 : vector<1x256xf32>
      %300 = arith.addf %296, %299 : vector<1x256xf32>
      %c0_117 = arith.constant 0 : index
      %c19_118 = arith.constant 19 : index
      %301 = vector.load %arg8[%c0_117, %c19_118] : memref<1x358xf32, #tpu.memory_space<vmem>>, vector<1x256xf32>
      %302 = vector.broadcast %35 : f32 to vector<1x256xf32>
      %303 = arith.mulf %302, %301 : vector<1x256xf32>
      %c0_119 = arith.constant 0 : index
      %c19_120 = arith.constant 19 : index
      %304 = vector.load %arg9[%c0_119, %c19_120] : memref<1x358xf32, #tpu.memory_space<vmem>>, vector<1x256xf32>
      %305 = vector.broadcast %84 : f32 to vector<1x256xf32>
      %306 = arith.mulf %305, %304 : vector<1x256xf32>
      %307 = arith.addf %303, %306 : vector<1x256xf32>
      %308 = arith.addf %300, %307 : vector<1x256xf32>
      %c0_121 = arith.constant 0 : index
      %c35_122 = arith.constant 35 : index
      %309 = vector.load %arg8[%c0_121, %c35_122] : memref<1x358xf32, #tpu.memory_space<vmem>>, vector<1x256xf32>
      %310 = vector.broadcast %42 : f32 to vector<1x256xf32>
      %311 = arith.mulf %310, %309 : vector<1x256xf32>
      %c0_123 = arith.constant 0 : index
      %c35_124 = arith.constant 35 : index
      %312 = vector.load %arg9[%c0_123, %c35_124] : memref<1x358xf32, #tpu.memory_space<vmem>>, vector<1x256xf32>
      %313 = vector.broadcast %91 : f32 to vector<1x256xf32>
      %314 = arith.mulf %313, %312 : vector<1x256xf32>
      %315 = arith.addf %311, %314 : vector<1x256xf32>
      %316 = arith.addf %308, %315 : vector<1x256xf32>
      %c0_125 = arith.constant 0 : index
      %c51_126 = arith.constant 51 : index
      %317 = vector.load %arg8[%c0_125, %c51_126] : memref<1x358xf32, #tpu.memory_space<vmem>>, vector<1x256xf32>
      %318 = vector.broadcast %49 : f32 to vector<1x256xf32>
      %319 = arith.mulf %318, %317 : vector<1x256xf32>
      %c0_127 = arith.constant 0 : index
      %c51_128 = arith.constant 51 : index
      %320 = vector.load %arg9[%c0_127, %c51_128] : memref<1x358xf32, #tpu.memory_space<vmem>>, vector<1x256xf32>
      %321 = vector.broadcast %98 : f32 to vector<1x256xf32>
      %322 = arith.mulf %321, %320 : vector<1x256xf32>
      %323 = arith.addf %319, %322 : vector<1x256xf32>
      %324 = arith.addf %316, %323 : vector<1x256xf32>
      %c0_129 = arith.constant 0 : index
      %c67_130 = arith.constant 67 : index
      %325 = vector.load %arg8[%c0_129, %c67_130] : memref<1x358xf32, #tpu.memory_space<vmem>>, vector<1x256xf32>
      %326 = vector.broadcast %56 : f32 to vector<1x256xf32>
      %327 = arith.mulf %326, %325 : vector<1x256xf32>
      %c0_131 = arith.constant 0 : index
      %c67_132 = arith.constant 67 : index
      %328 = vector.load %arg9[%c0_131, %c67_132] : memref<1x358xf32, #tpu.memory_space<vmem>>, vector<1x256xf32>
      %329 = vector.broadcast %105 : f32 to vector<1x256xf32>
      %330 = arith.mulf %329, %328 : vector<1x256xf32>
      %331 = arith.addf %327, %330 : vector<1x256xf32>
      %332 = arith.addf %324, %331 : vector<1x256xf32>
      %c0_133 = arith.constant 0 : index
      %c83_134 = arith.constant 83 : index
      %333 = vector.load %arg8[%c0_133, %c83_134] : memref<1x358xf32, #tpu.memory_space<vmem>>, vector<1x256xf32>
      %334 = vector.broadcast %63 : f32 to vector<1x256xf32>
      %335 = arith.mulf %334, %333 : vector<1x256xf32>
      %c0_135 = arith.constant 0 : index
      %c83_136 = arith.constant 83 : index
      %336 = vector.load %arg9[%c0_135, %c83_136] : memref<1x358xf32, #tpu.memory_space<vmem>>, vector<1x256xf32>
      %337 = vector.broadcast %112 : f32 to vector<1x256xf32>
      %338 = arith.mulf %337, %336 : vector<1x256xf32>
      %339 = arith.addf %335, %338 : vector<1x256xf32>
      %340 = arith.addf %332, %339 : vector<1x256xf32>
      %c0_137 = arith.constant 0 : index
      %c99 = arith.constant 99 : index
      %341 = vector.load %arg8[%c0_137, %c99] : memref<1x358xf32, #tpu.memory_space<vmem>>, vector<1x256xf32>
      %342 = vector.broadcast %70 : f32 to vector<1x256xf32>
      %343 = arith.mulf %342, %341 : vector<1x256xf32>
      %c0_138 = arith.constant 0 : index
      %c99_139 = arith.constant 99 : index
      %344 = vector.load %arg9[%c0_138, %c99_139] : memref<1x358xf32, #tpu.memory_space<vmem>>, vector<1x256xf32>
      %345 = vector.broadcast %119 : f32 to vector<1x256xf32>
      %346 = arith.mulf %345, %344 : vector<1x256xf32>
      %347 = arith.addf %343, %346 : vector<1x256xf32>
      %348 = arith.addf %340, %347 : vector<1x256xf32>
      %c3_140 = arith.constant 3 : index
      %c0_141 = arith.constant 0 : index
      %349 = vector.load %arg3[%c3_140, %c0_141] : memref<7x256xf32, #tpu.memory_space<vmem>>, vector<1x256xf32>
      %350 = arith.mulf %349, %348 : vector<1x256xf32>
      %c0_142 = arith.constant 0 : index
      %c4_143 = arith.constant 4 : index
      %351 = vector.load %arg8[%c0_142, %c4_143] : memref<1x358xf32, #tpu.memory_space<vmem>>, vector<1x256xf32>
      %352 = vector.broadcast %29 : f32 to vector<1x256xf32>
      %353 = arith.mulf %352, %351 : vector<1x256xf32>
      %c0_144 = arith.constant 0 : index
      %c4_145 = arith.constant 4 : index
      %354 = vector.load %arg9[%c0_144, %c4_145] : memref<1x358xf32, #tpu.memory_space<vmem>>, vector<1x256xf32>
      %355 = vector.broadcast %78 : f32 to vector<1x256xf32>
      %356 = arith.mulf %355, %354 : vector<1x256xf32>
      %357 = arith.addf %353, %356 : vector<1x256xf32>
      %c0_146 = arith.constant 0 : index
      %c20_147 = arith.constant 20 : index
      %358 = vector.load %arg8[%c0_146, %c20_147] : memref<1x358xf32, #tpu.memory_space<vmem>>, vector<1x256xf32>
      %359 = vector.broadcast %36 : f32 to vector<1x256xf32>
      %360 = arith.mulf %359, %358 : vector<1x256xf32>
      %c0_148 = arith.constant 0 : index
      %c20_149 = arith.constant 20 : index
      %361 = vector.load %arg9[%c0_148, %c20_149] : memref<1x358xf32, #tpu.memory_space<vmem>>, vector<1x256xf32>
      %362 = vector.broadcast %85 : f32 to vector<1x256xf32>
      %363 = arith.mulf %362, %361 : vector<1x256xf32>
      %364 = arith.addf %360, %363 : vector<1x256xf32>
      %365 = arith.addf %357, %364 : vector<1x256xf32>
      %c0_150 = arith.constant 0 : index
      %c36_151 = arith.constant 36 : index
      %366 = vector.load %arg8[%c0_150, %c36_151] : memref<1x358xf32, #tpu.memory_space<vmem>>, vector<1x256xf32>
      %367 = vector.broadcast %43 : f32 to vector<1x256xf32>
      %368 = arith.mulf %367, %366 : vector<1x256xf32>
      %c0_152 = arith.constant 0 : index
      %c36_153 = arith.constant 36 : index
      %369 = vector.load %arg9[%c0_152, %c36_153] : memref<1x358xf32, #tpu.memory_space<vmem>>, vector<1x256xf32>
      %370 = vector.broadcast %92 : f32 to vector<1x256xf32>
      %371 = arith.mulf %370, %369 : vector<1x256xf32>
      %372 = arith.addf %368, %371 : vector<1x256xf32>
      %373 = arith.addf %365, %372 : vector<1x256xf32>
      %c0_154 = arith.constant 0 : index
      %c52_155 = arith.constant 52 : index
      %374 = vector.load %arg8[%c0_154, %c52_155] : memref<1x358xf32, #tpu.memory_space<vmem>>, vector<1x256xf32>
      %375 = vector.broadcast %50 : f32 to vector<1x256xf32>
      %376 = arith.mulf %375, %374 : vector<1x256xf32>
      %c0_156 = arith.constant 0 : index
      %c52_157 = arith.constant 52 : index
      %377 = vector.load %arg9[%c0_156, %c52_157] : memref<1x358xf32, #tpu.memory_space<vmem>>, vector<1x256xf32>
      %378 = vector.broadcast %99 : f32 to vector<1x256xf32>
      %379 = arith.mulf %378, %377 : vector<1x256xf32>
      %380 = arith.addf %376, %379 : vector<1x256xf32>
      %381 = arith.addf %373, %380 : vector<1x256xf32>
      %c0_158 = arith.constant 0 : index
      %c68_159 = arith.constant 68 : index
      %382 = vector.load %arg8[%c0_158, %c68_159] : memref<1x358xf32, #tpu.memory_space<vmem>>, vector<1x256xf32>
      %383 = vector.broadcast %57 : f32 to vector<1x256xf32>
      %384 = arith.mulf %383, %382 : vector<1x256xf32>
      %c0_160 = arith.constant 0 : index
      %c68_161 = arith.constant 68 : index
      %385 = vector.load %arg9[%c0_160, %c68_161] : memref<1x358xf32, #tpu.memory_space<vmem>>, vector<1x256xf32>
      %386 = vector.broadcast %106 : f32 to vector<1x256xf32>
      %387 = arith.mulf %386, %385 : vector<1x256xf32>
      %388 = arith.addf %384, %387 : vector<1x256xf32>
      %389 = arith.addf %381, %388 : vector<1x256xf32>
      %c0_162 = arith.constant 0 : index
      %c84_163 = arith.constant 84 : index
      %390 = vector.load %arg8[%c0_162, %c84_163] : memref<1x358xf32, #tpu.memory_space<vmem>>, vector<1x256xf32>
      %391 = vector.broadcast %64 : f32 to vector<1x256xf32>
      %392 = arith.mulf %391, %390 : vector<1x256xf32>
      %c0_164 = arith.constant 0 : index
      %c84_165 = arith.constant 84 : index
      %393 = vector.load %arg9[%c0_164, %c84_165] : memref<1x358xf32, #tpu.memory_space<vmem>>, vector<1x256xf32>
      %394 = vector.broadcast %113 : f32 to vector<1x256xf32>
      %395 = arith.mulf %394, %393 : vector<1x256xf32>
      %396 = arith.addf %392, %395 : vector<1x256xf32>
      %397 = arith.addf %389, %396 : vector<1x256xf32>
      %c0_166 = arith.constant 0 : index
      %c100 = arith.constant 100 : index
      %398 = vector.load %arg8[%c0_166, %c100] : memref<1x358xf32, #tpu.memory_space<vmem>>, vector<1x256xf32>
      %399 = vector.broadcast %71 : f32 to vector<1x256xf32>
      %400 = arith.mulf %399, %398 : vector<1x256xf32>
      %c0_167 = arith.constant 0 : index
      %c100_168 = arith.constant 100 : index
      %401 = vector.load %arg9[%c0_167, %c100_168] : memref<1x358xf32, #tpu.memory_space<vmem>>, vector<1x256xf32>
      %402 = vector.broadcast %120 : f32 to vector<1x256xf32>
      %403 = arith.mulf %402, %401 : vector<1x256xf32>
      %404 = arith.addf %400, %403 : vector<1x256xf32>
      %405 = arith.addf %397, %404 : vector<1x256xf32>
      %c4_169 = arith.constant 4 : index
      %c0_170 = arith.constant 0 : index
      %406 = vector.load %arg3[%c4_169, %c0_170] : memref<7x256xf32, #tpu.memory_space<vmem>>, vector<1x256xf32>
      %407 = arith.mulf %406, %405 : vector<1x256xf32>
      %c0_171 = arith.constant 0 : index
      %c5_172 = arith.constant 5 : index
      %408 = vector.load %arg8[%c0_171, %c5_172] : memref<1x358xf32, #tpu.memory_space<vmem>>, vector<1x256xf32>
      %409 = vector.broadcast %30 : f32 to vector<1x256xf32>
      %410 = arith.mulf %409, %408 : vector<1x256xf32>
      %c0_173 = arith.constant 0 : index
      %c5_174 = arith.constant 5 : index
      %411 = vector.load %arg9[%c0_173, %c5_174] : memref<1x358xf32, #tpu.memory_space<vmem>>, vector<1x256xf32>
      %412 = vector.broadcast %79 : f32 to vector<1x256xf32>
      %413 = arith.mulf %412, %411 : vector<1x256xf32>
      %414 = arith.addf %410, %413 : vector<1x256xf32>
      %c0_175 = arith.constant 0 : index
      %c21_176 = arith.constant 21 : index
      %415 = vector.load %arg8[%c0_175, %c21_176] : memref<1x358xf32, #tpu.memory_space<vmem>>, vector<1x256xf32>
      %416 = vector.broadcast %37 : f32 to vector<1x256xf32>
      %417 = arith.mulf %416, %415 : vector<1x256xf32>
      %c0_177 = arith.constant 0 : index
      %c21_178 = arith.constant 21 : index
      %418 = vector.load %arg9[%c0_177, %c21_178] : memref<1x358xf32, #tpu.memory_space<vmem>>, vector<1x256xf32>
      %419 = vector.broadcast %86 : f32 to vector<1x256xf32>
      %420 = arith.mulf %419, %418 : vector<1x256xf32>
      %421 = arith.addf %417, %420 : vector<1x256xf32>
      %422 = arith.addf %414, %421 : vector<1x256xf32>
      %c0_179 = arith.constant 0 : index
      %c37_180 = arith.constant 37 : index
      %423 = vector.load %arg8[%c0_179, %c37_180] : memref<1x358xf32, #tpu.memory_space<vmem>>, vector<1x256xf32>
      %424 = vector.broadcast %44 : f32 to vector<1x256xf32>
      %425 = arith.mulf %424, %423 : vector<1x256xf32>
      %c0_181 = arith.constant 0 : index
      %c37_182 = arith.constant 37 : index
      %426 = vector.load %arg9[%c0_181, %c37_182] : memref<1x358xf32, #tpu.memory_space<vmem>>, vector<1x256xf32>
      %427 = vector.broadcast %93 : f32 to vector<1x256xf32>
      %428 = arith.mulf %427, %426 : vector<1x256xf32>
      %429 = arith.addf %425, %428 : vector<1x256xf32>
      %430 = arith.addf %422, %429 : vector<1x256xf32>
      %c0_183 = arith.constant 0 : index
      %c53_184 = arith.constant 53 : index
      %431 = vector.load %arg8[%c0_183, %c53_184] : memref<1x358xf32, #tpu.memory_space<vmem>>, vector<1x256xf32>
      %432 = vector.broadcast %51 : f32 to vector<1x256xf32>
      %433 = arith.mulf %432, %431 : vector<1x256xf32>
      %c0_185 = arith.constant 0 : index
      %c53_186 = arith.constant 53 : index
      %434 = vector.load %arg9[%c0_185, %c53_186] : memref<1x358xf32, #tpu.memory_space<vmem>>, vector<1x256xf32>
      %435 = vector.broadcast %100 : f32 to vector<1x256xf32>
      %436 = arith.mulf %435, %434 : vector<1x256xf32>
      %437 = arith.addf %433, %436 : vector<1x256xf32>
      %438 = arith.addf %430, %437 : vector<1x256xf32>
      %c0_187 = arith.constant 0 : index
      %c69_188 = arith.constant 69 : index
      %439 = vector.load %arg8[%c0_187, %c69_188] : memref<1x358xf32, #tpu.memory_space<vmem>>, vector<1x256xf32>
      %440 = vector.broadcast %58 : f32 to vector<1x256xf32>
      %441 = arith.mulf %440, %439 : vector<1x256xf32>
      %c0_189 = arith.constant 0 : index
      %c69_190 = arith.constant 69 : index
      %442 = vector.load %arg9[%c0_189, %c69_190] : memref<1x358xf32, #tpu.memory_space<vmem>>, vector<1x256xf32>
      %443 = vector.broadcast %107 : f32 to vector<1x256xf32>
      %444 = arith.mulf %443, %442 : vector<1x256xf32>
      %445 = arith.addf %441, %444 : vector<1x256xf32>
      %446 = arith.addf %438, %445 : vector<1x256xf32>
      %c0_191 = arith.constant 0 : index
      %c85_192 = arith.constant 85 : index
      %447 = vector.load %arg8[%c0_191, %c85_192] : memref<1x358xf32, #tpu.memory_space<vmem>>, vector<1x256xf32>
      %448 = vector.broadcast %65 : f32 to vector<1x256xf32>
      %449 = arith.mulf %448, %447 : vector<1x256xf32>
      %c0_193 = arith.constant 0 : index
      %c85_194 = arith.constant 85 : index
      %450 = vector.load %arg9[%c0_193, %c85_194] : memref<1x358xf32, #tpu.memory_space<vmem>>, vector<1x256xf32>
      %451 = vector.broadcast %114 : f32 to vector<1x256xf32>
      %452 = arith.mulf %451, %450 : vector<1x256xf32>
      %453 = arith.addf %449, %452 : vector<1x256xf32>
      %454 = arith.addf %446, %453 : vector<1x256xf32>
      %c0_195 = arith.constant 0 : index
      %c101 = arith.constant 101 : index
      %455 = vector.load %arg8[%c0_195, %c101] : memref<1x358xf32, #tpu.memory_space<vmem>>, vector<1x256xf32>
      %456 = vector.broadcast %72 : f32 to vector<1x256xf32>
      %457 = arith.mulf %456, %455 : vector<1x256xf32>
      %c0_196 = arith.constant 0 : index
      %c101_197 = arith.constant 101 : index
      %458 = vector.load %arg9[%c0_196, %c101_197] : memref<1x358xf32, #tpu.memory_space<vmem>>, vector<1x256xf32>
      %459 = vector.broadcast %121 : f32 to vector<1x256xf32>
      %460 = arith.mulf %459, %458 : vector<1x256xf32>
      %461 = arith.addf %457, %460 : vector<1x256xf32>
      %462 = arith.addf %454, %461 : vector<1x256xf32>
      %c5_198 = arith.constant 5 : index
      %c0_199 = arith.constant 0 : index
      %463 = vector.load %arg3[%c5_198, %c0_199] : memref<7x256xf32, #tpu.memory_space<vmem>>, vector<1x256xf32>
      %464 = arith.mulf %463, %462 : vector<1x256xf32>
      %c0_200 = arith.constant 0 : index
      %c6_201 = arith.constant 6 : index
      %465 = vector.load %arg8[%c0_200, %c6_201] : memref<1x358xf32, #tpu.memory_space<vmem>>, vector<1x256xf32>
      %466 = vector.broadcast %31 : f32 to vector<1x256xf32>
      %467 = arith.mulf %466, %465 : vector<1x256xf32>
      %c0_202 = arith.constant 0 : index
      %c6_203 = arith.constant 6 : index
      %468 = vector.load %arg9[%c0_202, %c6_203] : memref<1x358xf32, #tpu.memory_space<vmem>>, vector<1x256xf32>
      %469 = vector.broadcast %80 : f32 to vector<1x256xf32>
      %470 = arith.mulf %469, %468 : vector<1x256xf32>
      %471 = arith.addf %467, %470 : vector<1x256xf32>
      %c0_204 = arith.constant 0 : index
      %c22_205 = arith.constant 22 : index
      %472 = vector.load %arg8[%c0_204, %c22_205] : memref<1x358xf32, #tpu.memory_space<vmem>>, vector<1x256xf32>
      %473 = vector.broadcast %38 : f32 to vector<1x256xf32>
      %474 = arith.mulf %473, %472 : vector<1x256xf32>
      %c0_206 = arith.constant 0 : index
      %c22_207 = arith.constant 22 : index
      %475 = vector.load %arg9[%c0_206, %c22_207] : memref<1x358xf32, #tpu.memory_space<vmem>>, vector<1x256xf32>
      %476 = vector.broadcast %87 : f32 to vector<1x256xf32>
      %477 = arith.mulf %476, %475 : vector<1x256xf32>
      %478 = arith.addf %474, %477 : vector<1x256xf32>
      %479 = arith.addf %471, %478 : vector<1x256xf32>
      %c0_208 = arith.constant 0 : index
      %c38_209 = arith.constant 38 : index
      %480 = vector.load %arg8[%c0_208, %c38_209] : memref<1x358xf32, #tpu.memory_space<vmem>>, vector<1x256xf32>
      %481 = vector.broadcast %45 : f32 to vector<1x256xf32>
      %482 = arith.mulf %481, %480 : vector<1x256xf32>
      %c0_210 = arith.constant 0 : index
      %c38_211 = arith.constant 38 : index
      %483 = vector.load %arg9[%c0_210, %c38_211] : memref<1x358xf32, #tpu.memory_space<vmem>>, vector<1x256xf32>
      %484 = vector.broadcast %94 : f32 to vector<1x256xf32>
      %485 = arith.mulf %484, %483 : vector<1x256xf32>
      %486 = arith.addf %482, %485 : vector<1x256xf32>
      %487 = arith.addf %479, %486 : vector<1x256xf32>
      %c0_212 = arith.constant 0 : index
      %c54_213 = arith.constant 54 : index
      %488 = vector.load %arg8[%c0_212, %c54_213] : memref<1x358xf32, #tpu.memory_space<vmem>>, vector<1x256xf32>
      %489 = vector.broadcast %52 : f32 to vector<1x256xf32>
      %490 = arith.mulf %489, %488 : vector<1x256xf32>
      %c0_214 = arith.constant 0 : index
      %c54_215 = arith.constant 54 : index
      %491 = vector.load %arg9[%c0_214, %c54_215] : memref<1x358xf32, #tpu.memory_space<vmem>>, vector<1x256xf32>
      %492 = vector.broadcast %101 : f32 to vector<1x256xf32>
      %493 = arith.mulf %492, %491 : vector<1x256xf32>
      %494 = arith.addf %490, %493 : vector<1x256xf32>
      %495 = arith.addf %487, %494 : vector<1x256xf32>
      %c0_216 = arith.constant 0 : index
      %c70_217 = arith.constant 70 : index
      %496 = vector.load %arg8[%c0_216, %c70_217] : memref<1x358xf32, #tpu.memory_space<vmem>>, vector<1x256xf32>
      %497 = vector.broadcast %59 : f32 to vector<1x256xf32>
      %498 = arith.mulf %497, %496 : vector<1x256xf32>
      %c0_218 = arith.constant 0 : index
      %c70_219 = arith.constant 70 : index
      %499 = vector.load %arg9[%c0_218, %c70_219] : memref<1x358xf32, #tpu.memory_space<vmem>>, vector<1x256xf32>
      %500 = vector.broadcast %108 : f32 to vector<1x256xf32>
      %501 = arith.mulf %500, %499 : vector<1x256xf32>
      %502 = arith.addf %498, %501 : vector<1x256xf32>
      %503 = arith.addf %495, %502 : vector<1x256xf32>
      %c0_220 = arith.constant 0 : index
      %c86_221 = arith.constant 86 : index
      %504 = vector.load %arg8[%c0_220, %c86_221] : memref<1x358xf32, #tpu.memory_space<vmem>>, vector<1x256xf32>
      %505 = vector.broadcast %66 : f32 to vector<1x256xf32>
      %506 = arith.mulf %505, %504 : vector<1x256xf32>
      %c0_222 = arith.constant 0 : index
      %c86_223 = arith.constant 86 : index
      %507 = vector.load %arg9[%c0_222, %c86_223] : memref<1x358xf32, #tpu.memory_space<vmem>>, vector<1x256xf32>
      %508 = vector.broadcast %115 : f32 to vector<1x256xf32>
      %509 = arith.mulf %508, %507 : vector<1x256xf32>
      %510 = arith.addf %506, %509 : vector<1x256xf32>
      %511 = arith.addf %503, %510 : vector<1x256xf32>
      %c0_224 = arith.constant 0 : index
      %c102 = arith.constant 102 : index
      %512 = vector.load %arg8[%c0_224, %c102] : memref<1x358xf32, #tpu.memory_space<vmem>>, vector<1x256xf32>
      %513 = vector.broadcast %73 : f32 to vector<1x256xf32>
      %514 = arith.mulf %513, %512 : vector<1x256xf32>
      %c0_225 = arith.constant 0 : index
      %c102_226 = arith.constant 102 : index
      %515 = vector.load %arg9[%c0_225, %c102_226] : memref<1x358xf32, #tpu.memory_space<vmem>>, vector<1x256xf32>
      %516 = vector.broadcast %122 : f32 to vector<1x256xf32>
      %517 = arith.mulf %516, %515 : vector<1x256xf32>
      %518 = arith.addf %514, %517 : vector<1x256xf32>
      %519 = arith.addf %511, %518 : vector<1x256xf32>
      %c6_227 = arith.constant 6 : index
      %c0_228 = arith.constant 0 : index
      %520 = vector.load %arg3[%c6_227, %c0_228] : memref<7x256xf32, #tpu.memory_space<vmem>>, vector<1x256xf32>
      %521 = arith.mulf %520, %519 : vector<1x256xf32>
      %522 = arith.addf %179, %236 : vector<1x256xf32>
      %523 = arith.addf %293, %350 : vector<1x256xf32>
      %524 = arith.addf %407, %464 : vector<1x256xf32>
      %525 = arith.addf %522, %523 : vector<1x256xf32>
      %526 = arith.addf %524, %521 : vector<1x256xf32>
      %527 = arith.addf %525, %526 : vector<1x256xf32>
      %528 = arith.negf %527 : vector<1x256xf32>
      %529 = math.exp %528 : vector<1x256xf32>
      %cst_229 = arith.constant 1.000000e+00 : f32
      %530 = vector.broadcast %cst_229 : f32 to vector<1x256xf32>
      %531 = arith.addf %530, %529 : vector<1x256xf32>
      %532 = arith.divf %530, %531 : vector<1x256xf32>
      %c0_230 = arith.constant 0 : index
      %c0_231 = arith.constant 0 : index
      %c0_232 = arith.constant 0 : index
      %533 = vector.load %arg5[%c0_230, %c0_231, %c0_232] : memref<1x1x256xf32, #tpu.memory_space<vmem>>, vector<1x1x256xf32>
      %534 = vector.shape_cast %533 : vector<1x1x256xf32> to vector<1x256xf32>
      %535 = vector.shape_cast %532 : vector<1x256xf32> to vector<1x1x256xf32>
      tpu.vector_store %arg5[%c0_230, %c0_231, %c0_232], %535 {strides = array<i32>} : memref<1x1x256xf32, #tpu.memory_space<vmem>>, vector<1x1x256xf32>,
    } else {
    }
    return
  }
  func.func @transform_0(%arg0: i32, %arg1: i32) -> i32 {
    %c0_i32 = arith.constant 0 : i32
    %c0_i32_0 = arith.constant 0 : i32
    return %c0_i32 : i32
  }
  func.func @transform_1(%arg0: i32, %arg1: i32) -> (i32, i32) {
    %c0_i32 = arith.constant 0 : i32
    %c0_i32_0 = arith.constant 0 : i32
    %c0_i32_1 = arith.constant 0 : i32
    return %c0_i32, %c0_i32_0 : i32, i32
  }
  func.func @transform_2(%arg0: i32, %arg1: i32) -> (i32, i32, i32) {
    %c0_i32 = arith.constant 0 : i32
    %c0_i32_0 = arith.constant 0 : i32
    return %arg0, %arg1, %c0_i32 : i32, i32, i32
  }
  func.func @transform_3(%arg0: i32, %arg1: i32) -> (i32, i32, i32) {
    %c0_i32 = arith.constant 0 : i32
    %c0_i32_0 = arith.constant 0 : i32
    %c0_i32_1 = arith.constant 0 : i32
    return %arg0, %c0_i32, %c0_i32_0 : i32, i32, i32
  }
}

</mosaic_0001>

<bundles_post_ra>
// kernel: tpu_custom_call.1
= control target key start
LH: loop header
LB: loop body
LE: loop exit
PB: predicated region body
PF: predicated region fallthrough
CT: control target
= control target key end

     0   :  { %s2655_s0 = inlined_call_operand.hbm [shape: f32[98], index: 0, kind: input, shape index: {}]   ;;  %s2656_s1 = inlined_call_operand.hbm [shape: f32[7,256], index: 1, kind: input, shape index: {}]   ;;  %s2657_s2 = inlined_call_operand.hbm [shape: f32[2,4,256], index: 2, kind: input, shape index: {}]   ;;  %s2658_s3 = inlined_call_operand.hbm [shape: f32[2,1,256], index: 3, kind: output, shape index: {}]  }
   0x1   :  { %2726 = sst [smem:[#allocation70_spill]] %s2655_s0 }
   0x2   :  { %2727 = sst [smem:[#allocation71_spill]] %s2656_s1 }
   0x3   :  { %2728 = sst [smem:[#allocation72_spill]] %s2657_s2 }
   0x4   :  { %2729 = sst [smem:[#allocation73_spill]] %s2658_s3 }
   0x5   :  { %8 = vsyncpa [#allocation9], 0 }
   0x6   :  { %9 = vsyncpa [#allocation7], 0 }
   0x7   :  { %10 = vsyncpa [#allocation12], 0 }
   0x8   :  { %12 = vsyncpa [#allocation12 + $0x1], 0 }
   0x9   :  { %13 = vsyncpa [#allocation8], 0 }
   0xa   :  { %15 = vsyncpa [#allocation8 + $0x1], 0  ;;  %s1655_s12 = smov 0   ;;  %s1657_s13 = smov 0  }
   0xb   :  { %s1659_s14 = smov 0   ;;  %s1661_s15 = smov 0  }
   0xc   :  { %s1663_s16 = smov 0   ;;  %s1665_s17 = smov 0  }
   0xd LB: > { %2730 = sst [smem:[#allocation18_spill]] %s1594_s12  ;;  %s1231_s18 = sadd.s32 4294967295, %s1614_s17   ;;  %s1614_s17 = sphi %s1665_s17, %s21_s17   ;;  %s1610_s16 = sphi %s1663_s16, %s2876_s16   ;;  %s1606_s15 = sphi %s1661_s15, %s2875_s15   ;;  %s1602_s14 = sphi %s1659_s14, %s2874_s14   ;;  %s1598_s13 = sphi %s1657_s13, %s2873_s13   ;;  %s1594_s12 = sphi %s1655_s12, %s2872_s12  }
   0xe   : > { %2731 = sst [smem:[#allocation19_spill]] %s1598_s13  ;;  %s1232_s19 = sadd.s32 4294967294, %s1614_s17  }
   0xf   : > { %2732 = sst [smem:[#allocation20_spill]] %s1602_s14  ;;  %p97_p0 = scmp.ne.s32.totalorder %s1598_s13, %s1594_s12 }
  0x10   : > { %2733 = sst [smem:[#allocation21_spill]] %s1606_s15  ;;  %p1689_p1 = scmp.eq.s32.totalorder %s1231_s18, 0 }
  0x11   : > { %2734 = sst [smem:[#allocation22_spill]] %s1610_s16  ;;  %p1693_p2 = scmp.eq.s32.totalorder %s1231_s18, 1 }
  0x12   : > { %2735 = sst [smem:[#allocation23_spill]] %s1614_s17  ;;  %p127_p3 = scmp.eq.s32.totalorder %s1232_s19, 1 }
  0x13   : > { %s2736_s20 = scalar_select %p1689_p1, 1, 0 }
  0x14   : > { %p1699_p4 = por %p1689_p1, %p97_p0  ;;  %p1233_p5 = scmp.ge.s32.totalorder %s1614_s17, 1 }
  0x15   : > { %p1704_p6 = por %p127_p3, %p97_p0  ;;  %p134_p7 = scmp.lt.s32.totalorder %s1614_s17, 3 }
  0x16   : > { %s2738_s22 = scalar_select %p1699_p4, 1, 0 }
  0x17   : > { %s2739_s23 = scalar_select %p1704_p6, 1, 0 }
  0x18   : > { %p1709_p8 = pnand %p1233_p5, %p134_p7  ;;  %s1616_s25 = smov [#allocation10]  }
  0x19   : > { %2740 = sst [smem:[#allocation24_spill]] %s2739_s23  ;;  %s156_s26 = sshll.u32 %s1616_s25, 4  ;;  %s1716_s26 = int_to_ptr.vmem [resolvable:$true] %s156_s26 }
  0x1a   : > { %s2741_s24 = scalar_select %p1709_p8, 1, 0 }
  0x1b   : > { %p1362_p10 = pneg %p1709_p8  ;;  %s33_s28 = sadd.s32 1, %s1610_s16 }
  0x1c   : > { %p1727_p12 = scmp.ge.s32.totalorder %s33_s28, 2  ;;  %s2744_s0 = sld [smem:[#allocation70_spill]] }
  0x1d   : > { %p1720_p11 = pnand %p1362_p10, %p1689_p1 }
  0x1f   : > { %p1455_p0 = pneg %p1720_p11 }
  0x22   : > { %s1453_s5 = scalar_lea.hbm %s2744_s0, 16 }
  0x23   : > { %p1454_p13 = scmp.ne.s32.totalorder %s2744_s0, %s1453_s5  ;;  %p1460_p7 = scmp.lt.u32.totalorder %s1453_s5, %s2744_s0 }
  0x25   : > { %p1456_p3 = pnand %p1455_p0, %p1454_p13 }
  0x27   : > { %p1457_p5 = pneg %p1456_p3 }
  0x29   : > { %p1462_p10 = pnand %p1460_p7, %p1457_p5 }
  0x2b   : > { %1465 = shalt.err (!%p1462_p10)
}
  0x2c   : > { %s1617_s10 = smov [#allocation6]   ;;  %s2745_s1 = sld [smem:[#allocation71_spill]] }
  0x2d   : > { %1365 = dma.hbm_to_smem (!%p1720_p11), %s2744_s0, 16, %s1617_s10, [#allocation9]  }
  0x32   : > { %s1466_s30 = scalar_lea.hbm %s2745_s1, 256 }
  0x33   : > { %p1467_p13 = scmp.ne.s32.totalorder %s2745_s1, %s1466_s30  ;;  %p1473_p7 = scmp.lt.u32.totalorder %s1466_s30, %s2745_s1 }
  0x35   : > { %p1469_p3 = pnand %p1467_p13, %p1455_p0 }
  0x37   : > { %p1470_p5 = pneg %p1469_p3 }
  0x39   : > { %p1475_p10 = pnand %p1473_p7, %p1470_p5 }
  0x3b   : > { %1478 = shalt.err (!%p1475_p10)
}
  0x3c   : > { %s1479_s8 = scalar_lea.vmem %s1716_s26, 256  ;;  %p1487_p1 = scmp.lt.s32.totalorder %s1716_s26, %s1716_s26 }
  0x3d   : > { %p1480_p9 = scmp.ne.s32.totalorder %s1716_s26, %s1479_s8  ;;  %p1488_p13 = scmp.lt.s32.totalorder %s1479_s8, %s1479_s8 }
  0x3f   : > { %p1482_p6 = pnand %p1480_p9, %p1455_p0  ;;  %p1489_p3 = por %p1488_p13, %p1487_p1 }
  0x41   : > { %p1483_p4 = pneg %p1482_p6 }
  0x43   : > { %p1490_p8 = pnand %p1489_p3, %p1483_p4 }
  0x45   : > { %1493 = shalt.err (!%p1490_p8)
}
  0x46   : > { %1368 = dma.hbm_to_vmem [thread:$0]  (!%p1720_p11), %s2745_s1, 256, %s1716_s26, [#allocation7]  }
  0x47   : > { %s2878_s28 = smov (%p1727_p12, %s33_s28), 0  ;;  %s84_s27 = sadd.s32 1, %s1602_s14 }
  0x48   : > { %2746 = sst [smem:[#allocation25_spill]] %s2878_s28  ;;  %p91_p1 = scmp.ne.s32.totalorder %s1602_s14, %s1598_s13 }
  0x49   : > { %s79_s11 = ssub.s32 %s1610_s16, %s2878_s28  ;;  %p92_p4 = scmp.eq.s32.totalorder %s1614_s17, 0 }
  0x4a   : > { %p82_p6 = scmp.eq.s32.totalorder %s79_s11, 0  ;;  %p1789_p8 = por %p1693_p2, %p91_p1 }
  0x4b   : > { %p93_p9 = por %p92_p4, %p91_p1  ;;  %p1379_p0 = scmp.lt.s32.totalorder %s1614_s17, 2 }
  0x4c   : > { %s2747_s18 = scalar_select %p1789_p8, 1, 0 }
  0x4d   : > { %s1795_s19 = scalar_select %p82_p6, %s1602_s14, %s84_s27  }
  0x4e   : > { %2748 = sst [smem:[#allocation26_spill]] %s2747_s18  ;;  %s167_s26 = sand.u32 1, %s1602_s14  }
  0x4f   : > { %2749 = sst [smem:[#allocation27_spill]] %s1795_s19  ;;  %s1348_s25 = sshll.u32 %s1610_s16, 7 }
  0x50   : > { %s1237_s29 = sshll.u32 %s167_s26, 3  ;;  %s2750_s2 = sld [smem:[#allocation72_spill]] }
  0x51   : > { %s171_s21 = scalar_lea.vmem [#allocation11], %s1237_s29  ;;  %p1804_p2 = pnand %p1379_p0, %p93_p9 }
  0x52   : > { %s181_s5 = sshll.u32 %s171_s21, 4  ;;  %s168_s8 = scalar_lea.sflag [#allocation12], %s167_s26  ;;  %s1808_s5 = int_to_ptr.vmem [resolvable:$true] %s181_s5 }
  0x53   : > { %p1496_p12 = pneg %p1804_p2 }
  0x56   : > { %s1802_s6 = scalar_lea.hbm %s2750_s2, %s1348_s25  ;;  %s1499_s11 = scalar_lea.hbm %s2750_s2, 256 }
  0x57   : > { %s1494_s9 = scalar_lea.hbm %s1802_s6, 128  ;;  %p1500_p10 = scmp.lt.u32.totalorder %s1802_s6, %s2750_s2 }
  0x58   : > { %p1495_p11 = scmp.ne.s32.totalorder %s1802_s6, %s1494_s9  ;;  %p1501_p13 = scmp.lt.u32.totalorder %s1499_s11, %s1494_s9 }
  0x59   : > { %p1503_p1 = scmp.lt.u32.totalorder %s1494_s9, %s1802_s6 }
  0x5a   : > { %p1497_p5 = pnand %p1496_p12, %p1495_p11  ;;  %p1502_p3 = por %p1501_p13, %p1500_p10 }
  0x5c   : > { %p1498_p7 = pneg %p1497_p5  ;;  %p1504_p4 = por %p1503_p1, %p1502_p3 }
  0x5e   : > { %p1505_p6 = pnand %p1504_p4, %p1498_p7 }
  0x60   : > { %1508 = shalt.err (!%p1505_p6)
}
  0x61   : > { %s1509_s26 = scalar_lea.vmem %s1808_s5, 128  ;;  %s1618_s30 = smov [#allocation11]  }
  0x62   : > { %p1510_p9 = scmp.ne.s32.totalorder %s1808_s5, %s1509_s26  ;;  %s1514_s4 = sshll.u32 %s1618_s30, 4  ;;  %s1515_s4 = int_to_ptr.vmem [resolvable:$false] %s1514_s4 }
  0x63   : > { %s1516_s21 = scalar_lea.vmem %s1515_s4, 256  ;;  %p1517_p5 = scmp.lt.s32.totalorder %s1808_s5, %s1515_s4 }
  0x64   : > { %p1512_p0 = pnand %p1510_p9, %p1496_p12  ;;  %p1518_p10 = scmp.lt.s32.totalorder %s1516_s21, %s1509_s26 }
  0x66   : > { %p1513_p11 = pneg %p1512_p0  ;;  %p1519_p13 = por %p1518_p10, %p1517_p5 }
  0x68   : > { %p1520_p3 = pnand %p1519_p13, %p1513_p11 }
  0x6a   : > { %1523 = shalt.err (!%p1520_p3)
}
  0x6b   : > { %1372 = dma.hbm_to_vmem [thread:$0]  (!%p1804_p2), %s1802_s6, 128, %s1808_s5, %s168_s8  }
  0x6c   : > { %p2752_p7 = scmp.ne.s32.totalorder %s2741_s24, 0 }
  0x6e   : > { %190 = sbr.rel (%p2752_p7) target bundleno = 650 (0x28a), region = 32 }
  0x75   : > { %p2753_p12 = scmp.ne.s32.totalorder %s2736_s20, 0 }
  0x77   : > { %1577 = dma.done.wait (%p2753_p12), [#allocation9], 16  }
  0x78   : > { %1579 = vsyncadd (%p2753_p12), [#allocation9], 4294967280 }
  0x79   : > { %1581 = dma.done.wait (%p2753_p12), [#allocation7], 256  }
  0x7a   : > { %1583 = vsyncadd (%p2753_p12), [#allocation7], 4294967040  ;;  %s1846_s7 = sand.u32 1, %s1598_s13   ;;  %p2755_p2 = scmp.ne.s32.totalorder %s2738_s22, 0 }
  0x7b   : > { %2754 = sst [smem:[#allocation28_spill]] %s1846_s7  ;;  %s1243_s24 = sshll.u32 %s1846_s7, 3 }
  0x7c   : > { %s201_s6 = scalar_lea.sflag [#allocation12], %s1846_s7  ;;  %s204_s5 = scalar_lea.vmem [#allocation11], %s1243_s24 }
  0x7d   : > { %1585 = dma.done.wait (%p2755_p2), %s201_s6, 128  }
  0x7e   : > { %1587 = vsyncadd (%p2755_p2), %s201_s6, 4294967168 }
  0x7f   : > { %209 = sfence }
  0x80   : > { %v228_v0 = vld [vmem:[%s204_s5] sm:$0xff]  ;;  %vm232_vm0 = vcmask 1043456   ;;  %v271_v1 = vlaneseq  ;;  %v1619_v13 = vmov 0.0   ;;  %v1620_v14 = vmov 1966171168   ;;  %s1621_s20 = smov 51  }
  0x81   : > { %v230_v2 = vcombine.high %v228_v0, %v228_v0  ;;  %v233_v3 = vsel %vm232_vm0, %v228_v0, 0.0  ;;  %v247_v4 = vsel %vm232_vm0, %v228_v0, -inf  ;;  %v269_v15 = vunpack.c.l.s4 %v1620_v14  ;;  %s1865_s22 = sld [smem:[#allocation6 + $0xa]]  ;;  %s1867_s8 = sld [smem:[#allocation6 + $0x8]] }
  0x82   : > { %v234_v5 = vrot.slane %v233_v3, 4  ;;  %v248_v6 = vrot.slane %v247_v4, 4  ;;  %vm362_vm1 = vcmp.lt.s32.totalorder %v271_v1, 358  ;;  %v272_v25 = vshrl.u32 %v271_v1, 7  ;;  %s1869_s9 = sld [smem:[#allocation6 + $0xc]]  ;;  %s1871_s10 = sld [smem:[#allocation6 + $0x9]] }
  0x83   : > { %v240_v7 = vsel %vm232_vm0, %v230_v2, 0.0  ;;  %v254_v8 = vsel %vm232_vm0, %v230_v2, -inf  ;;  %364 = vst.msk [vmem:[#allocation4] sm:$0x7] %vm362_vm1, %v1619_v13  ;;  %365 = vst.msk [vmem:[#allocation5] sm:$0x7] %vm362_vm1, %v1619_v13  ;;  %v270_v24 = vunpack.c.0.s8 %v269_v15 }
  0x84   : > { %v235_v9 = vadd.f32 %v234_v5, %v233_v3  ;;  %v241_v10 = vrot.slane %v240_v7, 4  ;;  %v249_v11 = vmax.f32 %v247_v4, %v248_v6  ;;  %v255_v12 = vrot.slane %v254_v8, 4  ;;  %s1873_s27 = sld [smem:[#allocation6 + $0x10]]  ;;  %s1875_s11 = sld [smem:[#allocation6 + $0xb]] }
  0x85   : > { %v273_v35 = vsub.s32 %v270_v24, %v272_v25  ;;  %vm1857_vm2 = vcmp.lt.s32.totalorder %v271_v1, 256  ;;  %s1877_s25 = sld [smem:[#allocation6 + $0x12]]  ;;  %s1879_s29 = sld [smem:[#allocation6 + $0xf]]  ;;  %vm1904_vm3 = vcmp.ge.s32.totalorder %v271_v1, 51  ;;  %vm1909_vm4 = vcmp.lt.s32.totalorder %v271_v1, 307 }
  0x86   : > { %v236_v16 = vrot.slane %v235_v9, 2  ;;  %v242_v17 = vadd.f32 %v241_v10, %v240_v7  ;;  %v250_v18 = vrot.slane %v249_v11, 2  ;;  %v256_v19 = vmax.f32 %v254_v8, %v255_v12  ;;  %s1881_s26 = sld [smem:[#allocation6 + $0x3b]]  ;;  %s1883_s30 = sld [smem:[#allocation6 + $0x39]]  ;;  %vm377_vm6 = vmand %vm1904_vm3, %vm1909_vm4 }
  0x87   : > { %s1885_s4 = sld [smem:[#allocation6 + $0x3d]]  ;;  %s1887_s21 = sld [smem:[#allocation6 + $0x3a]]  ;;  %vm372_vm5 = vcmask 416768   ;;  %v753_v54 = vstv %s1865_s22  ;;  %v579_v56 = vstv %s1867_s8  ;;  %vm503_vm7 = vcmask 916480  }
  0x88   : > { %v237_v20 = vadd.f32 %v236_v16, %v235_v9  ;;  %v243_v21 = vrot.slane %v242_v17, 2  ;;  %v251_v22 = vmax.f32 %v249_v11, %v250_v18  ;;  %v257_v23 = vrot.slane %v256_v19, 2  ;;  %2758 = sst [smem:[#allocation29_spill]] %s1869_s9  ;;  %s1889_s24 = sld [smem:[#allocation6 + $0x41]] }
  0x89   : > { %2759 = sst [smem:[#allocation30_spill]] %s1871_s10  ;;  %s1893_s5 = sld [smem:[#allocation6 + $0x43]]  ;;  %v927_v57 = vstv %s1869_s9  ;;  %v666_v58 = vstv %s1871_s10  ;;  %vm516_vm8 = vcmask 785408   ;;  %vm529_vm9 = vcmask 654336  }
  0x8a   : > { %v238_v26 = vrot.slane %v237_v20, 1  ;;  %v244_v27 = vadd.f32 %v243_v21, %v242_v17  ;;  %v252_v28 = vrot.slane %v251_v22, 1  ;;  %v258_v29 = vmax.f32 %v256_v19, %v257_v23  ;;  %2760 = sst [smem:[#allocation31_spill]] %s1873_s27  ;;  %s1891_s6 = sld [smem:[#allocation6 + $0x3c]] }
  0x8b   : > { %2761 = sst [smem:[#allocation32_spill]] %s1875_s11  ;;  %s1897_s0 = sld [smem:[#allocation6 + $0xd]]  ;;  %v678_v59 = vstv %s1873_s27  ;;  %v840_v60 = vstv %s1875_s11  ;;  %v852_v61 = vstv %s1877_s25  ;;  %v591_v62 = vstv %s1879_s29 }
  0x8c   : > { %v239_v30 = vadd.f32 %v238_v26, %v237_v20  ;;  %v245_v31 = vrot.slane %v244_v27, 1  ;;  %v253_v32 = vmax.f32 %v251_v22, %v252_v28  ;;  %v259_v33 = vrot.slane %v258_v29, 1  ;;  %2762 = sst [smem:[#allocation33_spill]] %s1877_s25  ;;  %s1899_s1 = sld [smem:[#allocation6 + $0x3e]] }
  0x8d   : > { %2763 = sst [smem:[#allocation34_spill]] %s1879_s29  ;;  %s1901_s2 = sld [smem:[#allocation6 + $0x11]]  ;;  %v755_v63 = vstv %s1881_s26  ;;  %v581_v0 = vstv %s1883_s30  ;;  %v929_v1 = vstv %s1885_s4  ;;  %v668_v2 = vstv %s1887_s21 }
  0x8e   : > { %v246_v34 = vadd.f32 %v245_v31, %v244_v27  ;;  %v260_v36 = vmax.f32 %v258_v29, %v259_v33  ;;  %2764 = sst [smem:[#allocation35_spill]] %s1889_s24  ;;  %s1913_s28 = sld [smem:[#allocation6 + $0x42]]  ;;  %v680_v3 = vstv %s1889_s24  ;;  %vm542_vm10 = vcmask 523264  }
  0x8f   : > { %2766 = sst [smem:[#allocation37_spill]] %s1893_s5  ;;  %s1915_s16 = sld [smem:[#allocation6 + $0x17]]  ;;  %v854_v5 = vstv %s1893_s5  ;;  %vm555_vm11 = vcmask 392192   ;;  %vm568_vm12 = vcmask 261120   ;;  %vm831_vm13 = vcmask 1022976  }
  0x90   : > { %v267_v37 = vcombine.low %v239_v30, %v246_v34  ;;  %v290_v38 = vcombine.low %v253_v32, %v260_v36  ;;  %2765 = sst [smem:[#allocation36_spill]] %s1891_s6  ;;  %s1917_s19 = sld [smem:[#allocation6 + $0x48]]  ;;  %v842_v4 = vstv %s1891_s6  ;;  %vm744_vm14 = vcmask 1031168  }
  0x91   : > { %2768 = sst [smem:[#allocation39_spill]] %s1897_s0  ;;  %s1919_s14 = sld [smem:[#allocation6 + $0x13]]  ;;  %v1014_v7 = vstv %s1897_s0  ;;  %vm657_vm15 = vcmask 1039360   ;;  %vm918_vm0 = vcmask 1014784   ;;  %vm1005_vm1 = vcmask 1006592  }
  0x92   : > { %v274_v39 = vrot.slane %v267_v37, %v273_v35  ;;  %v297_v40 = vrot.slane %v290_v38, %v273_v35  ;;  %2769 = sst [smem:[#allocation40_spill]] %s1899_s1  ;;  %s1921_s13 = sld [smem:[#allocation6 + $0x44]]  ;;  %v1016_v8 = vstv %s1899_s1  ;;  %vm1092_vm3 = vcmask 998400  }
  0x93   : > { %2770 = sst [smem:[#allocation41_spill]] %s1901_s2  ;;  %s1923_s17 = sld [smem:[#allocation6 + $0x19]]  ;;  %v765_v9 = vstv %s1901_s2 }
  0x94   : > { %v281_v42 = vrot.slane %v274_v39, %v273_v35  ;;  %v304_v43 = vrot.slane %v297_v40, %v273_v35  ;;  %s1929_s23 = sld [smem:[#allocation6 + $0x4a]]  ;;  %s1931_s12 = sld [smem:[#allocation6 + $0x16]]  ;;  %v767_v10 = vstv %s1913_s28 }
  0x95   : > { %2775 = sst [smem:[#allocation42_spill]] %s1915_s16  ;;  %s1933_s3 = sld [smem:[#allocation6 + $0x47]]  ;;  %v690_v11 = vstv %s1915_s16 }
  0x96   : > { %287 = vst.msk [vmem:[#allocation2] sm:$0x3] %vm1857_vm2, %v281_v42  ;;  %306 = vst.msk [vmem:[#allocation3] sm:$0x3] %vm1857_vm2, %v304_v43  ;;  %s1935_s18 = sld [smem:[#allocation6 + $0x14]]  ;;  %s1938_s15 = sld [smem:[#allocation6 + $0x45]]  ;;  %v692_v12 = vstv %s1917_s19 }
  0x97   : > { %2776 = sst [smem:[#allocation43_spill]] %s1919_s14  ;;  %s1940_s7 = sld [smem:[#allocation6 + $0x18]]  ;;  %v939_v13 = vstv %s1919_s14 }
  0x98   : > { %2777 = sst [smem:[#allocation44_spill]] %s1921_s13  ;;  %s1977_s22 = sld [smem:[#allocation6 + $0x29]]  ;;  %v941_v14 = vstv %s1921_s13 }
  0x99   : > { %2778 = sst [smem:[#allocation45_spill]] %s1923_s17  ;;  %s1979_s8 = sld [smem:[#allocation6 + $0x5a]]  ;;  %v864_v16 = vstv %s1923_s17 }
  0x9a   : > { %2779 = sst [smem:[#allocation46_spill]] %s1929_s23  ;;  %s1958_s23 = sld [smem:[#allocation6 + $0x20]] }
  0x9b   : > { %2780 = sst [smem:[#allocation47_spill]] %s1931_s12  ;;  %s1951_s12 = sld [smem:[#allocation6 + $0x4f]] }
  0x9c   : > { %2781 = sst [smem:[#allocation48_spill]] %s1933_s3  ;;  %s1947_s3 = sld [smem:[#allocation6 + $0x49]] }
  0x9d   : > { %v366_v44 = vld [vmem:[#allocation2] sm:$0x3]  ;;  %v379_v46 = vld [vmem:[#allocation3] sm:$0x3]  ;;  %2782 = sst [smem:[#allocation49_spill]] %s1935_s18  ;;  %s1949_s18 = sld [smem:[#allocation6 + $0x1e]] }
  0x9e   : > { %v367_v45 = vmul.f32 0.25, %v366_v44  ;;  %2783 = sst [smem:[#allocation50_spill]] %s1938_s15  ;;  %s1953_s15 = sld [smem:[#allocation6 + $0x1a]]  ;;  %v1062_v36 = vstv %s1977_s22 }
  0x9f   : > { %2784 = sst [smem:[#allocation51_spill]] %s1940_s7  ;;  %s1956_s7 = sld [smem:[#allocation6 + $0x4b]]  ;;  %v1064_v42 = vstv %s1979_s8 }
  0xa0   : > { %369 = vrot.lane.b32.xlu0 %v367_v45, %s1621_s20  ;;  %2790 = sst [smem:[#allocation57_spill]] %s1958_s23  ;;  %s1985_s10 = sld [smem:[#allocation6 + $0x2d]]  ;;  %v876_v33 = vstv %s1958_s23 }
  0xa1   : > { %2787 = sst [smem:[#allocation54_spill]] %s1951_s12  ;;  %s1966_s12 = sld [smem:[#allocation6 + $0x4e]] }
  0xa2   : > { %2785 = sst [smem:[#allocation52_spill]] %s1947_s3  ;;  %s1987_s11 = sld [smem:[#allocation6 + $0x5e]]  ;;  %v779_v23 = vstv %s1947_s3 }
  0xa3   : > { %2786 = sst [smem:[#allocation53_spill]] %s1949_s18  ;;  %s1964_s18 = sld [smem:[#allocation6 + $0x51]] }
  0xa4   : > { %381 = vrot.lane.b32.xlu0 %v379_v46, %s1621_s20  ;;  %s1895_s20 = sld [smem:[#allocation6 + $0x40]]  ;;  %2788 = sst [smem:[#allocation55_spill]] %s1953_s15  ;;  %v951_v27 = vstv %s1953_s15 }
  0xa5   : > { %2789 = sst [smem:[#allocation56_spill]] %s1956_s7  ;;  %s1993_s29 = sld [smem:[#allocation6 + $0x2f]]  ;;  %v953_v28 = vstv %s1956_s7 }
  0xa6   : > { %2793 = sst [smem:[#allocation60_spill]] %s1977_s22  ;;  %s2797_s25 = sld [smem:[#allocation46_spill]]  ;;  %v813_v43 = vstv %s1985_s10 }
  0xa7   : > { %2792 = sst [smem:[#allocation59_spill]] %s1966_s12  ;;  %s1995_s26 = sld [smem:[#allocation6 + $0x60]]  ;;  %v617_v35 = vstv %s1966_s12 }
  0xa8   : > { %2794 = sst [smem:[#allocation61_spill]] %s1985_s10  ;;  %s2799_s30 = sld [smem:[#allocation47_spill]]  ;;  %v815_v44 = vstv %s1987_s11 }
  0xa9   : > { %2791 = sst [smem:[#allocation58_spill]] %s1964_s18  ;;  %s2800_s4 = sld [smem:[#allocation48_spill]]  ;;  %v878_v34 = vstv %s1964_s18 }
  0xaa   : > { %2767 = sst [smem:[#allocation38_spill]] %s1895_s20  ;;  %v593_v6 = vstv %s1895_s20  ;;  %s2801_s21 = sld [smem:[#allocation49_spill]] }
  0xab   : > { %2795 = sst [smem:[#allocation62_spill]] %s1987_s11  ;;  %s2001_s27 = sld [smem:[#allocation6 + $0x7]]  ;;  %v987_v45 = vstv %s1993_s29 }
  0xac   : > { %2796 = sst [smem:[#allocation63_spill]] %s1993_s29  ;;  %s2802_s9 = sld [smem:[#allocation50_spill]]  ;;  %v866_v17 = vstv %s2797_s25 }
  0xad   : > { %2798 = sst [smem:[#allocation46_spill]] %s1995_s26  ;;  %s2003_s24 = sld [smem:[#allocation6 + $0x38]]  ;;  %v989_v48 = vstv %s1995_s26 }
  0xae   : > { %s2803_s5 = sld [smem:[#allocation51_spill]]  ;;  %s2009_s20 = sld [smem:[#allocation6 + $0x30]]  ;;  %v603_v18 = vstv %s2799_s30 }
  0xaf   : > { %s2805_s6 = sld [smem:[#allocation53_spill]]  ;;  %s2011_s0 = sld [smem:[#allocation6 + $0x61]]  ;;  %v605_v19 = vstv %s2800_s4 }
  0xb0   : > { %s2807_s1 = sld [smem:[#allocation54_spill]]  ;;  %s2019_s2 = sld [smem:[#allocation6 + $0x15]]  ;;  %v1026_v20 = vstv %s2801_s21 }
  0xb1   : > { %s2021_s16 = sld [smem:[#allocation6 + $0x46]]  ;;  %s2029_s13 = sld [smem:[#allocation6 + $0x3f]] }
  0xb2   : > { %v1028_v21 = vstv %s2802_s9  ;;  %s2027_s14 = sld [smem:[#allocation6 + $0xe]]  ;;  %s2037_s30 = sld [smem:[#allocation6 + $0x23]] }
  0xb3   : > { %s2039_s21 = sld [smem:[#allocation6 + $0x54]]  ;;  %s2053_s7 = sld [smem:[#allocation6 + $0x2a]] }
  0xb4   : > { %2804 = sst [smem:[#allocation64_spill]] %s2009_s20  ;;  %v777_v22 = vstv %s2803_s5  ;;  %s2045_s5 = sld [smem:[#allocation6 + $0x1c]] }
  0xb5   : > { %2806 = sst [smem:[#allocation65_spill]] %s2011_s0  ;;  %v702_v25 = vstv %s2805_s6  ;;  %s2055_s15 = sld [smem:[#allocation6 + $0x5b]] }
  0xb6   : > { %2808 = sst [smem:[#allocation66_spill]] %s2019_s2  ;;  %v704_v26 = vstv %s2807_s1  ;;  %s2047_s1 = sld [smem:[#allocation6 + $0x4d]] }
  0xb7   : > { %s2059_s3 = sld [smem:[#allocation6 + $0x3]]  ;;  %s2061_s23 = sld [smem:[#allocation6 + $0x34]] }
  0xb8   : > { %s2067_s12 = sld [smem:[#allocation6 + $0x1]]  ;;  %s2069_s18 = sld [smem:[#allocation6 + $0x32]] }
  0xb9   : > { %s2711_s22 = smov 112   ;;  %s2081_s29 = sld [smem:[#allocation6 + $0x5]] }
  0xba   : > { %s2083_s11 = sld [smem:[#allocation6 + $0x36]]  ;;  %s2089_s17 = sld [smem:[#allocation6 + $0x2]] }
  0xbb   : > { %2809 = sst [smem:[#allocation67_spill]] %s2055_s15  ;;  %s2091_s6 = sld [smem:[#allocation6 + $0x33]] }
  0xbc   : > { %s2113_s9 = sld [smem:[#allocation6 + $0x4]]  ;;  %s2840_s28 = smov 96  }
  0xbd   : > { %2812 = sst [smem:[#allocation29_spill]] %s2059_s3  ;;  %s2178_s19 = sld [smem:[#allocation6 + $0x6]] }
  0xbe   : > { %2813 = sst [smem:[#allocation30_spill]] %s2061_s23  ;;  %s1624_s8 = smov 80  }
  0xbf   : > { %2814 = sst [smem:[#allocation68_spill]] %s2067_s12  ;;  %s1625_s26 = smov 64  }
  0xc0   : > { %2815 = sst [smem:[#allocation69_spill]] %s2069_s18  ;;  %s2413_s4 = sld [smem:[#allocation6 + $0x22]] }
  0xc1   : > { %2818 = sst [smem:[#allocation35_spill]] %s2081_s29  ;;  %s2449_s25 = sld [smem:[#allocation6 + $0x2e]] }
  0xc2   : > { %2819 = sst [smem:[#allocation36_spill]] %s2083_s11  ;;  %s2423_s10 = sld [smem:[#allocation6 + $0x59]] }
 0x112   : > { %v370_v49 = vpop.permute.xlu0 %369 }
 0x113   : > { %v371_v50 = vrot.slane %v370_v49, 7 }
 0x115   : > { %v373_v51 = vsel %vm372_vm5, %v371_v50, %v370_v49  ;;  %v493_v49 = vstv %s2001_s27  ;;  %v496_v50 = vstv %s2003_s24  ;;  %s2250_s27 = sld [smem:[#allocation6 + $0x1d]] }
 0x116   : > { %378 = vst.msk [vmem:[#allocation4] sm:$0x7] %vm377_vm6, %v373_v51  ;;  %v382_v52 = vpop.permute.xlu0 %381  ;;  %v1074_v51 = vstv %s2009_s20  ;;  %s2405_s20 = sld [smem:[#allocation6 + $0x57]]  ;;  %s2421_s24 = sld [smem:[#allocation6 + $0x5d]] }
 0x117   : > { %v383_v53 = vrot.slane %v382_v52, 7 }
 0x119   : > { %v384_v55 = vsel %vm372_vm5, %v383_v53, %v382_v52  ;;  %v1076_v52 = vstv %s2011_s0  ;;  %v520_v53 = vstv %s2019_s2  ;;  %s2824_s0 = smov 112   ;;  %s2210_s2 = sld [smem:[#allocation6 + $0x37]] }
 0x11a   : > { %386 = vst.msk [vmem:[#allocation5] sm:$0x7] %vm377_vm6, %v384_v55 }
 0x11d   : > { %v2013_v15 = vld [vmem:[#allocation4] sm:$0x7] }
 0x11e   : > { %v754_v29 = vmul.f32 %v753_v54, %v2013_v15  ;;  %v580_v31 = vmul.f32 %v579_v56, %v2013_v15  ;;  %v928_v46 = vmul.f32 %v927_v57, %v2013_v15  ;;  %v667_v47 = vmul.f32 %v666_v58, %v2013_v15 }
 0x11f   : > { %v522_v58 = vstv %s2021_s16  ;;  %s2429_s16 = sld [smem:[#allocation6 + $0x2c]] }
 0x121   : > { %v2031_v24 = vld [vmem:[#allocation5] sm:$0x7] }
 0x122   : > { %v756_v30 = vmul.f32 %v755_v63, %v2031_v24  ;;  %v582_v32 = vmul.f32 %v581_v0, %v2031_v24  ;;  %v930_v39 = vmul.f32 %v929_v1, %v2031_v24  ;;  %v669_v40 = vmul.f32 %v668_v2, %v2031_v24 }
 0x123   : > { %v681_v56 = vmul.f32 %v680_v3, %v2031_v24  ;;  %v843_v57 = vmul.f32 %v842_v4, %v2031_v24  ;;  %v507_v63 = vstv %s2027_s14  ;;  %v509_v0 = vstv %s2029_s13  ;;  %s2283_s14 = sld [smem:[#allocation6 + $0x4c]]  ;;  %s1626_s13 = smov 48  }
 0x124   : > { %v757_v37 = vadd.f32 %v756_v30, %v754_v29  ;;  %v583_v38 = vadd.f32 %v582_v32, %v580_v31  ;;  %v931_v54 = vadd.f32 %v930_v39, %v928_v46  ;;  %v670_v55 = vadd.f32 %v669_v40, %v667_v47 }
 0x125   : > { %v546_v1 = vstv %s2037_s30  ;;  %v679_v2 = vmul.f32 %v678_v59, %v2013_v15  ;;  %v841_v3 = vmul.f32 %v840_v60, %v2013_v15  ;;  %v548_v4 = vstv %s2039_s21  ;;  %s2451_s30 = sld [smem:[#allocation6 + $0x2b]]  ;;  %s1631_s21 = smov 125  }
 0x126   : > { %759 = vrot.lane.b32.xlu0 %v757_v37, %s2711_s22  ;;  %585 = vrot.lane.b32.xlu1 %v583_v38, %s2711_s22  ;;  %v533_v29 = vstv %s2045_s5  ;;  %v855_v30 = vmul.f32 %v854_v5, %v2031_v24  ;;  %v535_v31 = vstv %s2047_s1  ;;  %v594_v60 = vmul.f32 %v593_v6, %v2031_v24  ;;  %s2308_s1 = sld [smem:[#allocation6 + $0x1b]]  ;;  %s2352_s22 = sld [smem:[#allocation6 + $0x25]] }
 0x127   : > { %v559_v32 = vstv %s2053_s7  ;;  %v561_v37 = vstv %s2055_s15  ;;  %v682_v38 = vadd.f32 %v681_v56, %v679_v2  ;;  %v844_v59 = vadd.f32 %v843_v57, %v841_v3  ;;  %s2722_s15 = smov 96   ;;  %s2310_s7 = sld [smem:[#allocation6 + $0x1f]] }
 0x128   : > { %v748_v39 = vstv %s2059_s3  ;;  %v853_v40 = vmul.f32 %v852_v61, %v2013_v15  ;;  %v750_v46 = vstv %s2061_s23  ;;  %v574_v5 = vstv %s2067_s12  ;;  %s2138_s23 = sld [smem:[#allocation6 + $0x35]]  ;;  %s2285_s3 = sld [smem:[#allocation6 + $0x50]] }
 0x129   : > { %v576_v47 = vstv %s2069_s18  ;;  %v592_v6 = vmul.f32 %v591_v62, %v2013_v15  ;;  %v924_v61 = vstv %s2083_s11  ;;  %v1015_v56 = vmul.f32 %v1014_v7, %v2013_v15  ;;  %s2334_s12 = sld [smem:[#allocation6 + $0x56]]  ;;  %s2336_s18 = sld [smem:[#allocation6 + $0x52]] }
 0x12a   : > { %933 = vrot.lane.b32.xlu0 %v931_v54, %s2824_s0  ;;  %672 = vrot.lane.b32.xlu1 %v670_v55, %s2824_s0  ;;  %v922_v54 = vstv %s2081_s29  ;;  %v856_v55 = vadd.f32 %v855_v30, %v853_v40  ;;  %v661_v57 = vstv %s2089_s17  ;;  %v1017_v62 = vmul.f32 %v1016_v8, %v2031_v24  ;;  %s2365_s17 = sld [smem:[#allocation6 + $0x21]]  ;;  %s2395_s11 = sld [smem:[#allocation6 + $0x27]] }
 0x12b   : > { %v663_v2 = vstv %s2091_s6  ;;  %v595_v3 = vadd.f32 %v594_v60, %v592_v6  ;;  %v693_v30 = vmul.f32 %v692_v12, %v2031_v24  ;;  %v942_v7 = vmul.f32 %v941_v14, %v2031_v24  ;;  %s2397_s29 = sld [smem:[#allocation6 + $0x24]]  ;;  %s1627_s5 = smov 32  }
 0x12c   : > { %v606_v60 = vmul.f32 %v605_v19, %v2031_v24  ;;  %v1029_v8 = vmul.f32 %v1028_v21, %v2031_v24  ;;  %v691_v12 = vmul.f32 %v690_v11, %v2013_v15  ;;  %v780_v14 = vmul.f32 %v779_v23, %v2031_v24 }
 0x12d   : > { %v940_v19 = vmul.f32 %v939_v13, %v2013_v15  ;;  %v865_v21 = vmul.f32 %v864_v16, %v2013_v15  ;;  %v1027_v11 = vmul.f32 %v1026_v20, %v2013_v15  ;;  %v1018_v23 = vadd.f32 %v1017_v62, %v1015_v56 }
 0x12e   : > { %684 = vrot.lane.b32.xlu0 %v682_v38, %s2722_s15  ;;  %846 = vrot.lane.b32.xlu1 %v844_v59, %s2824_s0  ;;  %v768_v38 = vmul.f32 %v767_v10, %v2031_v24  ;;  %v867_v59 = vmul.f32 %v866_v17, %v2031_v24  ;;  %v766_v10 = vmul.f32 %v765_v9, %v2013_v15  ;;  %v835_v17 = vstv %s2113_s9  ;;  %s2383_s9 = sld [smem:[#allocation6 + $0x55]]  ;;  %s2863_s15 = sld [smem:[#allocation28_spill]] }
 0x12f   : > { %v604_v9 = vmul.f32 %v603_v18, %v2013_v15  ;;  %v694_v6 = vadd.f32 %v693_v30, %v691_v12  ;;  %v778_v13 = vmul.f32 %v777_v22, %v2013_v15  ;;  %v2195_v18 = vadd.f32 %v1029_v8, %v1027_v11 }
 0x130   : > { %v769_v40 = vadd.f32 %v768_v38, %v766_v10  ;;  %v868_v16 = vadd.f32 %v867_v59, %v865_v21  ;;  %v2202_v56 = vmul.f32 %v702_v25, %v2013_v15  ;;  %v2207_v22 = vmul.f32 %v704_v26, %v2031_v24 }
 0x131   : > { %v781_v20 = vadd.f32 %v780_v14, %v778_v13  ;;  %v837_v62 = vstv %s2138_s23  ;;  %v1063_v38 = vmul.f32 %v1062_v36, %v2013_v15  ;;  %v1065_v30 = vmul.f32 %v1064_v42, %v2031_v24  ;;  %s2381_s23 = sld [smem:[#allocation6 + $0x58]] }
 0x132   : > { %858 = vrot.lane.b32.xlu0 %v856_v55, %s2840_s28  ;;  %597 = vrot.lane.b32.xlu1 %v595_v3, %s2840_s28  ;;  %v943_v55 = vadd.f32 %v942_v7, %v940_v19  ;;  %v607_v3 = vadd.f32 %v606_v60, %v604_v9  ;;  %v814_v7 = vmul.f32 %v813_v43, %v2013_v15  ;;  %v1009_v60 = vstv %s2178_s19  ;;  %s2439_s19 = sld [smem:[#allocation6 + $0x5f]] }
 0x133   : > { %v816_v25 = vmul.f32 %v815_v44, %v2031_v24  ;;  %v2227_v26 = vmul.f32 %v951_v27, %v2013_v15  ;;  %v988_v59 = vmul.f32 %v987_v45, %v2013_v15  ;;  %v990_v36 = vmul.f32 %v989_v48, %v2031_v24 }
 0x134   : > { %v494_v42 = vmul.f32 %v493_v49, %v2013_v15  ;;  %v2238_v43 = vadd.f32 %v1065_v30, %v1063_v38  ;;  %v497_v27 = vmul.f32 %v496_v50, %v2031_v24  ;;  %v1075_v45 = vmul.f32 %v1074_v51, %v2013_v15  ;;  %s1244_s6 = sshll.u32 %s2863_s15, 1 }
 0x135   : > { %v2240_v44 = vadd.f32 %v816_v25, %v814_v7  ;;  %v2252_v48 = vadd.f32 %v990_v36, %v988_v59  ;;  %v1077_v49 = vmul.f32 %v1076_v52, %v2031_v24  ;;  %v521_v50 = vmul.f32 %v520_v53, %v2013_v15 }
 0x136   : > { %1020 = vrot.lane.b32.xlu0 %v1018_v23, %s2824_s0  ;;  %771 = vrot.lane.b32.xlu1 %v769_v40, %s2840_s28  ;;  %v2261_v51 = vadd.f32 %v497_v27, %v494_v42  ;;  %v523_v8 = vmul.f32 %v522_v58, %v2031_v24  ;;  %v508_v10 = vmul.f32 %v507_v63, %v2013_v15  ;;  %v1011_v9 = vstv %s2210_s2  ;;  %s2403_s2 = sld [smem:[#allocation6 + $0x53]] }
 0x137   : > { %v510_v12 = vmul.f32 %v509_v0, %v2031_v24  ;;  %v2272_v52 = vadd.f32 %v1077_v49, %v1075_v45  ;;  %v547_v53 = vmul.f32 %v546_v1, %v2013_v15  ;;  %v549_v14 = vmul.f32 %v548_v4, %v2031_v24 }
 0x138   : > { %v534_v58 = vmul.f32 %v533_v29, %v2013_v15  ;;  %v2287_v63 = vadd.f32 %v523_v8, %v521_v50  ;;  %v536_v1 = vmul.f32 %v535_v31, %v2031_v24  ;;  %v560_v4 = vmul.f32 %v559_v32, %v2013_v15 }
 0x139   : > { %v2289_v0 = vadd.f32 %v510_v12, %v508_v10  ;;  %v2299_v29 = vadd.f32 %v549_v14, %v547_v53  ;;  %v562_v19 = vmul.f32 %v561_v37, %v2031_v24  ;;  %v749_v21 = vmul.f32 %v748_v39, %v2013_v15 }
 0x13a   : > { %696 = vrot.lane.b32.xlu0 %v694_v6, %s1624_s8  ;;  %945 = vrot.lane.b32.xlu1 %v943_v55, %s2840_s28  ;;  %v2312_v31 = vadd.f32 %v536_v1, %v534_v58  ;;  %v751_v32 = vmul.f32 %v750_v46, %v2031_v24  ;;  %v575_v11 = vmul.f32 %v574_v5, %v2013_v15  ;;  %v791_v38 = vstv %s2285_s3  ;;  %s2441_s3 = sld [smem:[#allocation6 + $0x5c]] }
 0x13b   : > { %v577_v37 = vmul.f32 %v576_v47, %v2031_v24  ;;  %v954_v39 = vmul.f32 %v953_v28, %v2031_v24  ;;  %v2326_v23 = vadd.f32 %v562_v19, %v560_v4  ;;  %v923_v40 = vmul.f32 %v922_v54, %v2013_v15 }
 0x13c   : > { %v925_v46 = vmul.f32 %v924_v61, %v2031_v24  ;;  %v2338_v5 = vadd.f32 %v751_v32, %v749_v21  ;;  %v662_v28 = vmul.f32 %v661_v57, %v2013_v15  ;;  %v664_v6 = vmul.f32 %v663_v2, %v2031_v24 }
 0x13d   : > { %v2340_v47 = vadd.f32 %v577_v37, %v575_v11  ;;  %v615_v54 = vstv %s2250_s27  ;;  %v836_v13 = vmul.f32 %v835_v17, %v2013_v15  ;;  %v838_v57 = vmul.f32 %v837_v62, %v2031_v24  ;;  %s2415_s27 = sld [smem:[#allocation6 + $0x26]] }
 0x13e   : > { %870 = vrot.lane.b32.xlu0 %v868_v16, %s1624_s8  ;;  %609 = vrot.lane.b32.xlu1 %v607_v3, %s1624_s8  ;;  %v2354_v61 = vadd.f32 %v925_v46, %v923_v40  ;;  %v879_v2 = vmul.f32 %v878_v34, %v2031_v24  ;;  %v2367_v55 = vadd.f32 %v664_v6, %v662_v28  ;;  %v1040_v62 = vstv %s2283_s14  ;;  %s2433_s14 = sld [smem:[#allocation6 + $0x28]] }
 0x13f   : > { %v1010_v16 = vmul.f32 %v1009_v60, %v2013_v15  ;;  %v1012_v3 = vmul.f32 %v1011_v9, %v2031_v24  ;;  %v706_v17 = vadd.f32 %v2207_v22, %v2202_v56  ;;  %v2377_v34 = vadd.f32 %v838_v57, %v836_v13 }
 0x140   : > { %v616_v56 = vmul.f32 %v615_v54, %v2013_v15  ;;  %v1038_v22 = vstv %s2308_s1  ;;  %v789_v7 = vstv %s2310_s7  ;;  %v1041_v59 = vmul.f32 %v1040_v62, %v2031_v24  ;;  %s1629_s1 = smov 124   ;;  %s1630_s7 = smov 127  }
 0x141   : > { %v2385_v30 = vadd.f32 %v1012_v3, %v1010_v16  ;;  %v792_v36 = vmul.f32 %v791_v38, %v2031_v24  ;;  %v716_v42 = vstv %s2334_s12  ;;  %v965_v27 = vstv %s2336_s18  ;;  %s1632_s12 = smov 123   ;;  %s1633_s18 = smov 122  }
 0x142   : > { %1032 = vrot.lane.b32.xlu0 %v2195_v18, %s2840_s28  ;;  %783 = vrot.lane.b32.xlu1 %v781_v20, %s1624_s8  ;;  %v955_v18 = vadd.f32 %v954_v39, %v2227_v26  ;;  %v618_v20 = vmul.f32 %v617_v35, %v2031_v24  ;;  %v877_v35 = vmul.f32 %v876_v33, %v2013_v15  ;;  %v714_v49 = vstv %s2352_s22  ;;  %s2864_s22 = sld [smem:[#allocation21_spill]] }
 0x143   : > { %v1039_v33 = vmul.f32 %v1038_v22, %v2013_v15  ;;  %v790_v45 = vmul.f32 %v789_v7, %v2013_v15  ;;  %v963_v50 = vstv %s2365_s17  ;;  %v717_v10 = vmul.f32 %v716_v42, %v2031_v24 }
 0x144   : > { %v880_v25 = vadd.f32 %v879_v2, %v877_v35  ;;  %v619_v26 = vadd.f32 %v618_v20, %v616_v56  ;;  %v966_v12 = vmul.f32 %v965_v27, %v2031_v24  ;;  %v890_v53 = vstv %s2381_s23 }
 0x145   : > { %v1042_v60 = vadd.f32 %v1041_v59, %v1039_v33  ;;  %v793_v8 = vadd.f32 %v792_v36, %v790_v45  ;;  %v629_v14 = vstv %s2383_s9  ;;  %v715_v58 = vmul.f32 %v714_v49, %v2013_v15  ;;  %s227_s9 = scalar_lea.vmem [#allocation13], %s1244_s6 }
 0x146   : > { %708 = vrot.lane.b32.xlu0 %v706_v17, %s1625_s26  ;;  %957 = vrot.lane.b32.xlu1 %v955_v18, %s1624_s8  ;;  %v964_v1 = vmul.f32 %v963_v50, %v2013_v15  ;;  %v888_v4 = vstv %s2395_s11  ;;  %v627_v19 = vstv %s2397_s29  ;;  %v891_v32 = vmul.f32 %v890_v53, %v2031_v24 }
 0x147   : > { %v718_v21 = vadd.f32 %v717_v10, %v715_v58  ;;  %v630_v11 = vmul.f32 %v629_v14, %v2031_v24  ;;  %v1052_v37 = vstv %s2403_s2  ;;  %v803_v39 = vstv %s2405_s20  ;;  %s2866_s2 = sld [smem:[#allocation73_spill]] }
 0x148   : > { %v967_v9 = vadd.f32 %v966_v12, %v964_v1  ;;  %v889_v40 = vmul.f32 %v888_v4, %v2013_v15  ;;  %v628_v46 = vmul.f32 %v627_v19, %v2013_v15  ;;  %v1050_v28 = vstv %s2413_s4  ;;  %s1349_s23 = sshll.u32 %s2864_s22, 5  ;;  %s1112_s4 = scalar_lea.sflag [#allocation8], %s2863_s15 }
 0x149   : > { %v801_v6 = vstv %s2415_s27  ;;  %v1053_v57 = vmul.f32 %v1052_v37, %v2031_v24  ;;  %v804_v2 = vmul.f32 %v803_v39, %v2031_v24  ;;  %v728_v16 = vstv %s2421_s24  ;;  %s1634_s24 = smov [#allocation13]  }
 0x14a   : > { %882 = vrot.lane.b32.xlu0 %v880_v25, %s1625_s26  ;;  %621 = vrot.lane.b32.xlu1 %v619_v26, %s1625_s26  ;;  %v892_v54 = vadd.f32 %v891_v32, %v889_v40  ;;  %v631_v13 = vadd.f32 %v630_v11, %v628_v46  ;;  %v977_v3 = vstv %s2423_s10  ;;  %v1051_v17 = vmul.f32 %v1050_v28, %v2013_v15  ;;  %s1528_s10 = sshll.u32 %s1634_s24, 4  ;;  %s1529_s10 = int_to_ptr.vmem [resolvable:$false] %s1528_s10 }
 0x14b   : > { %v802_v18 = vmul.f32 %v801_v6, %v2013_v15  ;;  %v726_v20 = vstv %s2429_s16  ;;  %v975_v62 = vstv %s2433_s14  ;;  %v729_v56 = vmul.f32 %v728_v16, %v2031_v24  ;;  %s1530_s16 = scalar_lea.vmem %s1529_s10, 64 }
 0x14c   : > { %v1054_v38 = vadd.f32 %v1053_v57, %v1051_v17  ;;  %v978_v22 = vmul.f32 %v977_v3, %v2031_v24  ;;  %v902_v7 = vstv %s2439_s19  ;;  %v641_v25 = vstv %s2441_s3 }
 0x14d   : > { %v805_v35 = vadd.f32 %v804_v2, %v802_v18  ;;  %v727_v26 = vmul.f32 %v726_v20, %v2013_v15  ;;  %v976_v59 = vmul.f32 %v975_v62, %v2013_v15  ;;  %v900_v36 = vstv %s2449_s25  ;;  %s2604_s20 = scalar_lea.hbm %s2866_s2, %s1349_s23 }
 0x14e   : > { %1044 = vrot.lane.b32.xlu0 %v1042_v60, %s1624_s8  ;;  %795 = vrot.lane.b32.xlu1 %v793_v8, %s1625_s26  ;;  %v639_v42 = vstv %s2451_s30  ;;  %v903_v45 = vmul.f32 %v902_v7, %v2031_v24  ;;  %v642_v49 = vmul.f32 %v641_v25, %v2031_v24  ;;  %v901_v50 = vmul.f32 %v900_v36, %v2013_v15 }
 0x14f   : > { %v730_v27 = vadd.f32 %v729_v56, %v727_v26  ;;  %v979_v33 = vadd.f32 %v978_v22, %v976_v59  ;;  %v640_v60 = vmul.f32 %v639_v42, %v2013_v15 }
 0x150   : > { %v904_v8 = vadd.f32 %v903_v45, %v901_v50 }
 0x151   : > { %v643_v10 = vadd.f32 %v642_v49, %v640_v60 }
 0x152   : > { %720 = vrot.lane.b32.xlu0 %v718_v21, %s1626_s13  ;;  %969 = vrot.lane.b32.xlu1 %v967_v9, %s1625_s26 }
 0x156   : > { %894 = vrot.lane.b32.xlu0 %v892_v54, %s1626_s13  ;;  %633 = vrot.lane.b32.xlu1 %v631_v13, %s1626_s13 }
 0x15a   : > { %1056 = vrot.lane.b32.xlu0 %v1054_v38, %s1625_s26  ;;  %807 = vrot.lane.b32.xlu1 %v805_v35, %s1626_s13 }
 0x15e   : > { %732 = vrot.lane.b32.xlu0 %v730_v27, %s1627_s5  ;;  %981 = vrot.lane.b32.xlu1 %v979_v33, %s1626_s13 }
 0x162   : > { %906 = vrot.lane.b32.xlu0 %v904_v8, %s1627_s5  ;;  %645 = vrot.lane.b32.xlu1 %v643_v10, %s1627_s5 }
 0x166   : > { %1068 = vrot.lane.b32.xlu0 %v2238_v43, %s1626_s13  ;;  %819 = vrot.lane.b32.xlu1 %v2240_v44, %s1627_s5 }
 0x16a   : > { %993 = vrot.lane.b32.xlu1 %v2252_v48, %s1627_s5  ;;  %500 = vrot.lane.b32.xlu0 %v2261_v51, %s2824_s0  ;;  %s2565_s0 = sld [smem:[#allocation6 + $0x31]] }
 0x16e   : > { %1080 = vrot.lane.b32.xlu1 %v2272_v52, %s1627_s5  ;;  %526 = vrot.lane.b32.xlu0 %v2287_v63, %s1624_s8  ;;  %s2570_s8 = sld [smem:[#allocation6]] }
 0x172   : > { %513 = vrot.lane.b32.xlu1 %v2289_v0, %s2840_s28  ;;  %552 = vrot.lane.b32.xlu0 %v2299_v29, %s1626_s13  ;;  %s1628_s28 = smov 126  }
 0x176   : > { %539 = vrot.lane.b32.xlu1 %v2312_v31, %s1625_s26  ;;  %s1126_s26 = sshll.u32 %s227_s9, 4  ;;  %s2606_s26 = int_to_ptr.vmem [resolvable:$true] %s1126_s26 }
 0x177   : > { %s1524_s27 = scalar_lea.vmem %s2606_s26, 32  ;;  %p1531_p9 = scmp.lt.s32.totalorder %s2606_s26, %s1529_s10 }
 0x178   : > { %p1525_p1 = scmp.ne.s32.totalorder %s2606_s26, %s1524_s27  ;;  %p1532_p0 = scmp.lt.s32.totalorder %s1530_s16, %s1524_s27 }
 0x17a   : > { %565 = vrot.lane.b32.xlu1 %v2326_v23, %s1627_s5  ;;  %p1526_p4 = pnand %p1525_p1, %p1789_p8  ;;  %p1533_p11 = por %p1532_p0, %p1531_p9 }
 0x17c   : > { %p1527_p6 = pneg %p1526_p4 }
 0x17e   : > { %p1534_p5 = pnand %p1533_p11, %p1527_p6 }
 0x198   : > { %v760_v15 = vpop.permute.xlu0 %759  ;;  %v586_v24 = vpop.permute.xlu1 %585 }
 0x199   : > { %v761_v9 = vrot.slane %v760_v15, 1  ;;  %v587_v37 = vrot.slane %v586_v24, 1 }
 0x19b   : > { %v762_v28 = vsel %vm503_vm7, %v760_v15, %v761_v9  ;;  %v588_v13 = vsel %vm503_vm7, %v586_v24, %v587_v37 }
 0x19c   : > { %v934_v43 = vpop.permute.xlu0 %933  ;;  %v673_v44 = vpop.permute.xlu1 %672  ;;  %v764_v38 = vadd.f32 %v762_v28, %v2338_v5  ;;  %v590_v35 = vadd.f32 %v588_v13, %v2340_v47 }
 0x19d   : > { %v935_v39 = vrot.slane %v934_v43, 1  ;;  %v674_v40 = vrot.slane %v673_v44, 1 }
 0x19f   : > { %v936_v57 = vsel %vm503_vm7, %v934_v43, %v935_v39  ;;  %v675_v17 = vsel %vm503_vm7, %v673_v44, %v674_v40 }
 0x1a0   : > { %v685_v48 = vpop.permute.xlu0 %684  ;;  %v847_v51 = vpop.permute.xlu1 %846  ;;  %v2524_v56 = vadd.f32 %v936_v57, %v2354_v61  ;;  %v677_v42 = vadd.f32 %v675_v17, %v2367_v55 }
 0x1a1   : > { %v848_v46 = vrot.slane %v847_v51, 1  ;;  %v686_v2 = vrot.slane %v685_v48, 1 }
 0x1a3   : > { %v849_v18 = vsel %vm503_vm7, %v847_v51, %v848_v46  ;;  %v687_v25 = vsel %vm516_vm8, %v685_v48, %v686_v2 }
 0x1a4   : > { %v859_v52 = vpop.permute.xlu0 %858  ;;  %v598_v12 = vpop.permute.xlu1 %597  ;;  %v851_v27 = vadd.f32 %v849_v18, %v2377_v34  ;;  %v689_v50 = vadd.f32 %v687_v25, %v677_v42 }
 0x1a5   : > { %v860_v16 = vrot.slane %v859_v52, 1  ;;  %v599_v3 = vrot.slane %v598_v12, 1 }
 0x1a7   : > { %v861_v26 = vsel %vm516_vm8, %v859_v52, %v860_v16  ;;  %v600_v5 = vsel %vm516_vm8, %v598_v12, %v599_v3 }
 0x1a8   : > { %v2494_v63 = vpop.permute.xlu0 %1020  ;;  %v772_v53 = vpop.permute.xlu1 %771  ;;  %v863_v60 = vadd.f32 %v861_v26, %v851_v27  ;;  %v602_v48 = vadd.f32 %v600_v5, %v590_v35 }
 0x1a9   : > { %v773_v20 = vrot.slane %v772_v53, 1  ;;  %v1022_v47 = vrot.slane %v2494_v63, 1 }
 0x1ab   : > { %v774_v61 = vsel %vm516_vm8, %v772_v53, %v773_v20  ;;  %v1023_v51 = vsel %vm503_vm7, %v2494_v63, %v1022_v47 }
 0x1ac   : > { %v697_v0 = vpop.permute.xlu0 %696  ;;  %v2496_v14 = vpop.permute.xlu1 %945  ;;  %v776_v52 = vadd.f32 %v774_v61, %v764_v38 }
 0x1ad   : > { %v698_v62 = vrot.slane %v697_v0, 1  ;;  %v947_v8 = vrot.slane %v2496_v14, 1 }
 0x1af   : > { %v699_v33 = vsel %vm529_vm9, %v697_v0, %v698_v62 }
 0x1b0   : > { %v871_v29 = vpop.permute.xlu0 %870  ;;  %v2498_v58 = vpop.permute.xlu1 %609  ;;  %v701_v12 = vadd.f32 %v699_v33, %v689_v50 }
 0x1b1   : > { %v872_v59 = vrot.slane %v871_v29, 1  ;;  %v611_v45 = vrot.slane %v2498_v58, 1 }
 0x1b3   : > { %v873_v15 = vsel %vm529_vm9, %v871_v29, %v872_v59  ;;  %v612_v53 = vsel %vm529_vm9, %v2498_v58, %v611_v45  ;;  %v948_v29 = vsel %vm516_vm8, %v2496_v14, %v947_v8 }
 0x1b4   : > { %v2500_v31 = vpop.permute.xlu0 %1032  ;;  %v2502_v23 = vpop.permute.xlu1 %783  ;;  %v614_v57 = vadd.f32 %v612_v53, %v602_v48  ;;  %v950_v33 = vadd.f32 %v948_v29, %v2524_v56  ;;  %v488_v29 = vld [vmem:[#allocation5] sm:$0x3] }
 0x1b5   : > { %v785_v10 = vrot.slane %v2502_v23, 1  ;;  %v1034_v2 = vrot.slane %v2500_v31, 1 }
 0x1b7   : > { %v786_v39 = vsel %vm529_vm9, %v2502_v23, %v785_v10  ;;  %v1035_v8 = vsel %vm516_vm8, %v2500_v31, %v1034_v2 }
 0x1b8   : > { %v709_v1 = vpop.permute.xlu0 %708  ;;  %v2504_v4 = vpop.permute.xlu1 %957 }
 0x1b9   : > { %v710_v36 = vrot.slane %v709_v1, 1  ;;  %v959_v14 = vrot.slane %v2504_v4, 1 }
 0x1bb   : > { %v711_v24 = vsel %vm542_vm10, %v709_v1, %v710_v36  ;;  %v875_v1 = vadd.f32 %v873_v15, %v863_v60 }
 0x1bc   : > { %v2506_v19 = vpop.permute.xlu0 %882  ;;  %v2508_v21 = vpop.permute.xlu1 %621  ;;  %v713_v40 = vadd.f32 %v711_v24, %v701_v12  ;;  %v1025_v24 = vadd.f32 %v1023_v51, %v2385_v30 }
 0x1bd   : > { %v884_v43 = vrot.slane %v2506_v19, 1  ;;  %v623_v44 = vrot.slane %v2508_v21, 1 }
 0x1bf   : > { %v885_v63 = vsel %vm542_vm10, %v2506_v19, %v884_v43  ;;  %v624_v58 = vsel %vm542_vm10, %v2508_v21, %v623_v44  ;;  %v788_v19 = vadd.f32 %v786_v39, %v776_v52  ;;  %v1037_v52 = vadd.f32 %v1035_v8, %v1025_v24 }
 0x1c0   : > { %v2510_v32 = vpop.permute.xlu0 %1044  ;;  %v2512_v11 = vpop.permute.xlu1 %795  ;;  %v887_v20 = vadd.f32 %v885_v63, %v875_v1  ;;  %v626_v62 = vadd.f32 %v624_v58, %v614_v57 }
 0x1c4   : > { %v721_v6 = vpop.permute.xlu0 %720  ;;  %v2515_v54 = vpop.permute.xlu1 %969 }
 0x1c5   : > { %v722_v49 = vrot.slane %v721_v6, 1  ;;  %v971_v26 = vrot.slane %v2515_v54, 1 }
 0x1c7   : > { %v723_v0 = vsel %vm555_vm11, %v721_v6, %v722_v49  ;;  %v797_v6 = vrot.slane %v2512_v11, 1  ;;  %v972_v10 = vsel %vm542_vm10, %v2515_v54, %v971_v26 }
 0x1c8   : > { %v895_v22 = vpop.permute.xlu0 %894  ;;  %v634_v7 = vpop.permute.xlu1 %633  ;;  %v725_v16 = vadd.f32 %v723_v0, %v713_v40 }
 0x1c9   : > { %v896_v9 = vrot.slane %v895_v22, 1  ;;  %v635_v37 = vrot.slane %v634_v7, 1  ;;  %v798_v25 = vsel %vm542_vm10, %v2512_v11, %v797_v6 }
 0x1ca   : > { %v800_v45 = vadd.f32 %v798_v25, %v788_v19 }
 0x1cb   : > { %v897_v23 = vsel %vm555_vm11, %v895_v22, %v896_v9  ;;  %v636_v3 = vsel %vm555_vm11, %v634_v7, %v635_v37  ;;  %v960_v22 = vsel %vm529_vm9, %v2504_v4, %v959_v14  ;;  %v1046_v7 = vrot.slane %v2510_v32, 1 }
 0x1cc   : > { %v2537_v55 = vpop.permute.xlu0 %1056  ;;  %v808_v34 = vpop.permute.xlu1 %807  ;;  %v899_v42 = vadd.f32 %v897_v23, %v887_v20  ;;  %v638_v27 = vadd.f32 %v636_v3, %v626_v62  ;;  %v962_v43 = vadd.f32 %v960_v22, %v950_v33  ;;  %v489_v37 = vstv %s2565_s0 }
 0x1cd   : > { %v809_v17 = vrot.slane %v808_v34, 1  ;;  %v1047_v56 = vsel %vm529_vm9, %v2510_v32, %v1046_v7 }
 0x1ce   : > { %v974_v12 = vadd.f32 %v972_v10, %v962_v43  ;;  %v1049_v1 = vadd.f32 %v1047_v56, %v1037_v52  ;;  %v826_v43 = vld [vmem:[#allocation10 + $0x3] ss:$8 sm:$0x3]  ;;  %v652_v56 = vld [vmem:[#allocation10 + $0x1] ss:$8 sm:$0x3] }
 0x1cf   : > { %v810_v5 = vsel %vm555_vm11, %v808_v34, %v809_v17  ;;  %v1058_v34 = vrot.slane %v2537_v55, 1  ;;  %v1000_v52 = vld [vmem:[#allocation10 + $0x5] ss:$8 sm:$0x3] }
 0x1d0   : > { %v733_v46 = vpop.permute.xlu0 %732  ;;  %v982_v28 = vpop.permute.xlu1 %981  ;;  %v812_v44 = vadd.f32 %v810_v5, %v800_v45 }
 0x1d1   : > { %v734_v13 = vrot.slane %v733_v46, 1  ;;  %v983_v11 = vrot.slane %v982_v28, 1  ;;  %v1059_v0 = vsel %vm542_vm10, %v2537_v55, %v1058_v34 }
 0x1d2   : > { %v1061_v58 = vadd.f32 %v1059_v0, %v1049_v1 }
 0x1d3   : > { %v735_v18 = vsel %vm568_vm12, %v733_v46, %v734_v13  ;;  %v984_v31 = vsel %vm555_vm11, %v982_v28, %v983_v11  ;;  %v485_v46 = vld [vmem:[#allocation4] sm:$0x3]  ;;  %v486_v28 = vstv %s2570_s8  ;;  %v490_v13 = vmul.f32 %v489_v37, %v488_v29 }
 0x1d4   : > { %v737_v21 = vadd.f32 %v735_v18, %v725_v16  ;;  %v907_v38 = vpop.permute.xlu0 %906  ;;  %v646_v35 = vpop.permute.xlu1 %645  ;;  %v986_v39 = vadd.f32 %v984_v31, %v974_v12  ;;  %v487_v16 = vmul.f32 %v486_v28, %v485_v46 }
 0x1d5   : > { %v908_v59 = vrot.slane %v907_v38, 1  ;;  %v647_v36 = vrot.slane %v646_v35, 1 }
 0x1d6   : > { %741 = vrot.lane.b32.xlu1 %v737_v21, %s1628_s28  ;;  %v491_v17 = vadd.f32 %v490_v13, %v487_v16 }
 0x1d7   : > { %v909_v47 = vsel %vm568_vm12, %v907_v38, %v908_v59  ;;  %v648_v61 = vsel %vm568_vm12, %v646_v35, %v647_v36 }
 0x1d8   : > { %v911_v49 = vadd.f32 %v909_v47, %v899_v42  ;;  %v650_v4 = vadd.f32 %v648_v61, %v638_v27  ;;  %v1069_v50 = vpop.permute.xlu0 %1068  ;;  %v820_v60 = vpop.permute.xlu1 %819 }
 0x1d9   : > { %v821_v15 = vrot.slane %v820_v60, 1  ;;  %v1070_v48 = vrot.slane %v1069_v50, 1 }
 0x1da   : > { %915 = vrot.lane.b32.xlu1 %v911_v49, %s1629_s1  ;;  %654 = vrot.lane.b32.xlu0 %v650_v4, %s1630_s7 }
 0x1db   : > { %v822_v54 = vsel %vm568_vm12, %v820_v60, %v821_v15  ;;  %v1071_v32 = vsel %vm555_vm11, %v1069_v50, %v1070_v48  ;;  %v739_v15 = vld [vmem:[#allocation10 + $0x2] ss:$8 sm:$0x3] }
 0x1dc   : > { %v824_v53 = vadd.f32 %v822_v54, %v812_v44  ;;  %v994_v30 = vpop.permute.xlu1 %993  ;;  %v501_v51 = vpop.permute.xlu0 %500  ;;  %v1073_v14 = vadd.f32 %v1071_v32, %v1061_v58  ;;  %v1087_v32 = vld [vmem:[#allocation10 + $0x6] ss:$8 sm:$0x3] }
 0x1dd   : > { %v995_v9 = vrot.slane %v994_v30, 1  ;;  %v502_v63 = vrot.slane %v501_v51, 1 }
 0x1de   : > { %828 = vrot.lane.b32.xlu0 %v824_v53, %s1631_s21 }
 0x1df   : > { %v996_v40 = vsel %vm568_vm12, %v994_v30, %v995_v9  ;;  %v504_v23 = vsel %vm503_vm7, %v501_v51, %v502_v63  ;;  %v572_v30 = vld [vmem:[#allocation10] ss:$8 sm:$0x3]  ;;  %v913_v51 = vld [vmem:[#allocation10 + $0x4] ss:$8 sm:$0x3] }
 0x1e0   : > { %v998_v6 = vadd.f32 %v996_v40, %v986_v39  ;;  %v1081_v57 = vpop.permute.xlu1 %1080  ;;  %v527_v2 = vpop.permute.xlu0 %526  ;;  %v506_v21 = vadd.f32 %v504_v23, %v491_v17 }
 0x1e1   : > { %v1082_v55 = vrot.slane %v1081_v57, 1  ;;  %v528_v20 = vrot.slane %v527_v2, 1 }
 0x1e2   : > { %1002 = vrot.lane.b32.xlu0 %v998_v6, %s1632_s12 }
 0x1e3   : > { %v1083_v3 = vsel %vm568_vm12, %v1081_v57, %v1082_v55  ;;  %v530_v59 = vsel %vm529_vm9, %v527_v2, %v528_v20 }
 0x1e4   : > { %v1085_v18 = vadd.f32 %v1083_v3, %v1073_v14  ;;  %v514_v19 = vpop.permute.xlu1 %513  ;;  %v553_v38 = vpop.permute.xlu0 %552 }
 0x1e5   : > { %v515_v62 = vrot.slane %v514_v19, 1  ;;  %v554_v36 = vrot.slane %v553_v38, 1 }
 0x1e6   : > { %1089 = vrot.lane.b32.xlu1 %v1085_v18, %s1633_s18 }
 0x1e7   : > { %v517_v35 = vsel %vm516_vm8, %v514_v19, %v515_v62  ;;  %v556_v11 = vsel %vm555_vm11, %v553_v38, %v554_v36 }
 0x1e8   : > { %v519_v25 = vadd.f32 %v517_v35, %v506_v21  ;;  %v540_v26 = vpop.permute.xlu1 %539 }
 0x1e9   : > { %v541_v22 = vrot.slane %v540_v26, 1 }
 0x1ea   : > { %v532_v7 = vadd.f32 %v530_v59, %v519_v25 }
 0x1eb   : > { %v543_v42 = vsel %vm542_vm10, %v540_v26, %v541_v22 }
 0x1ec   : > { %v545_v27 = vadd.f32 %v543_v42, %v532_v7  ;;  %v566_v5 = vpop.permute.xlu1 %565 }
 0x1ed   : > { %v567_v47 = vrot.slane %v566_v5, 1 }
 0x1ee   : > { %v558_v61 = vadd.f32 %v556_v11, %v545_v27 }
 0x1ef   : > { %v569_v33 = vsel %vm568_vm12, %v566_v5, %v567_v47 }
 0x1f0   : > { %v571_v45 = vadd.f32 %v569_v33, %v558_v61 }
 0x1f2   : > { %v573_v46 = vmul.f32 %v572_v30, %v571_v45 }
 0x248   : > { %v742_v49 = vpop.permute.xlu1 %741 }
 0x249   : > { %v743_v8 = vrot.slane %v742_v49, 1 }
 0x24b   : > { %v745_v48 = vsel %vm744_vm14, %v742_v49, %v743_v8 }
 0x24c   : > { %v655_v4 = vpop.permute.xlu0 %654  ;;  %v916_v50 = vpop.permute.xlu1 %915  ;;  %v747_v37 = vmul.f32 %v745_v48, %v739_v15 }
 0x24d   : > { %v656_v10 = vrot.slane %v655_v4, 1  ;;  %v917_v24 = vrot.slane %v916_v50, 1 }
 0x24f   : > { %v658_v54 = vsel %vm657_vm15, %v655_v4, %v656_v10  ;;  %v919_v0 = vsel %vm918_vm0, %v916_v50, %v917_v24 }
 0x250   : > { %v829_v60 = vpop.permute.xlu0 %828  ;;  %v660_v29 = vmul.f32 %v658_v54, %v652_v56  ;;  %v921_v28 = vmul.f32 %v919_v0, %v913_v51 }
 0x251   : > { %v830_v34 = vrot.slane %v829_v60, 1 }
 0x252   : > { %v1096_v6 = vadd.f32 %v660_v29, %v573_v46 }
 0x253   : > { %v832_v44 = vsel %vm831_vm13, %v829_v60, %v830_v34 }
 0x254   : > { %v1003_v31 = vpop.permute.xlu0 %1002  ;;  %v834_v53 = vmul.f32 %v832_v44, %v826_v43 }
 0x255   : > { %v1004_v12 = vrot.slane %v1003_v31, 1 }
 0x256   : > { %v1097_v63 = vadd.f32 %v834_v53, %v747_v37 }
 0x257   : > { %v1006_v9 = vsel %vm1005_vm1, %v1003_v31, %v1004_v12 }
 0x258   : > { %v1008_v1 = vmul.f32 %v1006_v9, %v1000_v52  ;;  %v1090_v39 = vpop.permute.xlu1 %1089  ;;  %v1099_v2 = vadd.f32 %v1097_v63, %v1096_v6 }
 0x259   : > { %v1091_v40 = vrot.slane %v1090_v39, 1 }
 0x25a   : > { %v1098_v13 = vadd.f32 %v1008_v1, %v921_v28 }
 0x25b   : > { %v1093_v58 = vsel %vm1092_vm3, %v1090_v39, %v1091_v40 }
 0x25c   : > { %v1095_v57 = vmul.f32 %v1093_v58, %v1087_v32 }
 0x25e   : > { %v1100_v55 = vadd.f32 %v1098_v13, %v1095_v57 }
 0x260   : > { %v1101_v14 = vadd.f32 %v1100_v55, %v1099_v2 }
 0x262   : > { %v1342_v16 = vmul.f32 -1.442695, %v1101_v14 }
 0x264   : > { %1449 = vpow2.f32 %v1342_v16 }
 0x26e   : > { %v1450_v23 = vpop.eup %1449 }
 0x26f   : > { %v1105_v3 = vadd.f32 1.0, %v1450_v23 }
 0x271   : > { %1451 = vrcp.f32 %v1105_v3 }
 0x27b   : > { %v1452_v17 = vpop.eup %1451 }
 0x27c   : > { %1110 = vst.msk [vmem:[%s227_s9] sm:$0x3] %vm1857_vm2, %v1452_v17 }
 0x27d   : > { %1537 = shalt.err (!%p1534_p5)
}
 0x27e   : > { %s1538_s14 = scalar_lea.hbm %s2604_s20, 32  ;;  %s1542_s13 = scalar_lea.hbm %s2866_s2, 64 }
 0x27f   : > { %p1539_p10 = scmp.ne.s32.totalorder %s2604_s20, %s1538_s14  ;;  %p1543_p7 = scmp.lt.u32.totalorder %s2604_s20, %s2866_s2 }
 0x280   : > { %p1544_p12 = scmp.lt.u32.totalorder %s1542_s13, %s1538_s14  ;;  %p1546_p1 = scmp.lt.u32.totalorder %s1538_s14, %s2604_s20 }
 0x281   : > { %p1540_p13 = pnand %p1539_p10, %p1789_p8 }
 0x282   : > { %p1545_p2 = por %p1544_p12, %p1543_p7 }
 0x283   : > { %p1541_p3 = pneg %p1540_p13 }
 0x284   : > { %p1547_p4 = por %p1546_p1, %p1545_p2 }
 0x286   : > { %p1548_p6 = pnand %p1547_p4, %p1541_p3 }
 0x288   : > { %1551 = shalt.err (!%p1548_p6)
}
 0x289   : > { %1360 = dma.vmem_to_hbm [thread:$0]  (%p1789_p8), %s2606_s26, 32, %s2604_s20, %s1112_s4  }
 0x28a PF: > { %s2867_s5 = sld [smem:[#allocation18_spill]]  ;;  %s2868_s0 = sld [smem:[#allocation24_spill]] }
 0x28b   : > { %s2869_s28 = sld [smem:[#allocation23_spill]] }
 0x290   : > { %s1138_s8 = sand.u32 1, %s2867_s5   ;;  %p2870_p9 = scmp.ne.s32.totalorder %s2868_s0, 0 }
 0x291   : > { %p2871_p0 = scmp.ge.s32.totalorder %s2869_s28, 2  ;;  %s1139_s1 = scalar_lea.sflag [#allocation8], %s1138_s8 }
 0x293   : > { %p1374_p11 = pnand %p2871_p0, %p2870_p9 }
 0x295   : > { %1589 = dma.done.wait (!%p1374_p11), %s1139_s1, 32  }
 0x296   : > { %1591 = vsyncadd (!%p1374_p11), %s1139_s1, 4294967264  ;;  %s21_s17 = sadd.s32 1, %s2869_s28   ;;  %s2872_s12 = sld [smem:[#allocation19_spill]] }
 0x297   : > { %p18_p5 = scmp.ge.s32.totalorder %s21_s17, 4   ;;  %s2873_s13 = sld [smem:[#allocation20_spill]] }
 0x298   : > { %s2874_s14 = sld [smem:[#allocation27_spill]]  ;;  %s2875_s15 = sld [smem:[#allocation22_spill]] }
 0x299   : > { %s2876_s16 = sld [smem:[#allocation25_spill]]  ;;  %20 = sbr.rel (!%p18_p5) target bundleno = 13 (0xd), region = 105 }
 0x2a0   :  { %1144 = vsyncpa [#allocation7], 1 }
 0x2a1   :  { %1146 = vsyncpa [#allocation7 + $0x1], 1 }
 0x2a2   :  { %1147 = vsyncpa [#allocation12], 1 }
 0x2a3   :  { %1149 = vsyncpa [#allocation12 + $0x1], 1 }
 0x2a4   :  { %1150 = vsyncpa [#allocation8], 1 }
 0x2a5   :  { %1152 = vsyncpa [#allocation8 + $0x1], 1 }
 0x2a6   :  { %1153 = vsyncpa [#allocation9], 1 }
 0x2a7   :  { %1155 = vsyncpa [#allocation9 + $0x1], 1 }

</bundles_post_ra>
